<compile_context>
chip_gen: v7x
topology: tpu7x:2x2x1
jax: 0.10.0
libtpu: 0.0.40
codegen_flags: <defaults>
</compile_context>

<pallas_src>
import jax
import jax.numpy as jnp
from jax.experimental import pallas as pl
from jax.experimental.pallas import tpu as pltpu

HIDDEN = 256
LANE = 128


def _rrd_mlp_kernel(xT_ref, w1T_ref, b1_ref, w2T_ref, b2_ref, w3_ref, b3_ref,
                    pred_ref):
    # xT:  (d_in_pad, tile_r)  matmul dtype (bf16 or f32)
    # w1T: (H, d_in_pad), w2T: (H, H)       matmul dtype
    # b1, b2: (H, 1) epilogue dtype; w3: (H, 1) f32; b3: (1, 1) f32
    xT = xT_ref[...]

    # Layer 1: one MXU matmul over the fused [obs, acts, obs-obs_next] input.
    h1 = jnp.dot(w1T_ref[...], xT, preferred_element_type=jnp.float32)
    h1 = jnp.maximum(h1.astype(b1_ref.dtype) + b1_ref[...], 0.0)   # bias + ReLU

    # Layer 2.
    h2 = jnp.dot(w2T_ref[...], h1.astype(w2T_ref.dtype),
                 preferred_element_type=jnp.float32)
    h2 = jnp.maximum(h2.astype(b2_ref.dtype) + b2_ref[...], 0.0)   # bias + ReLU

    # Layer 3 (256 -> 1) head off the MXU: f32 VPU multiply + sublane reduce.
    prod = h2.astype(jnp.float32) * w3_ref[...]                    # (H, tile_r)
    # Lane-dense (1, tile_r) store — no masked (tile_r, 1) column writes.
    pred_ref[...] = jnp.sum(prod, axis=0, keepdims=True) + b3_ref[...]


def _default_epilogue_dtype():
    """bf16 epilogues on v6e / v7x (bf16 VALU); f32 elsewhere (v5e and older)."""
    try:
        kind = jax.devices()[0].device_kind.lower()
    except Exception:  # pragma: no cover - conservative fallback
        return jnp.float32
    if ("v6" in kind) or ("v7" in kind) or ("7x" in kind):
        return jnp.bfloat16
    return jnp.float32


def _is_dual_core():
    try:
        kind = jax.devices()[0].device_kind.lower()
    except Exception:  # pragma: no cover
        return False
    return ("v7" in kind) or ("7x" in kind)


def init_params(key, d_obs, d_acts, hidden=HIDDEN):
    """nn.Linear-style init (uniform +/- 1/sqrt(fan_in)).
    Weights stored as (in_features, out_features) — transpose of PyTorch."""
    d_in = 2 * d_obs + d_acts
    ks = jax.random.split(key, 6)

    def lin(kw, kb, fan_in, fan_out):
        bound = 1.0 / jnp.sqrt(float(fan_in))
        w = jax.random.uniform(kw, (fan_in, fan_out), jnp.float32, -bound, bound)
        b = jax.random.uniform(kb, (1, fan_out), jnp.float32, -bound, bound)
        return w, b

    w1, b1 = lin(ks[0], ks[1], d_in, hidden)
    w2, b2 = lin(ks[2], ks[3], hidden, hidden)
    w3, b3 = lin(ks[4], ks[5], hidden, 1)
    return dict(
        w1=w1, b1=b1,
        w2=w2, b2=b2,
        w3_row=w3.T,          # (1, hidden) — used as a VPU column in the kernel
        b3=b3.reshape(1, 1),
    )


def rrd_forward(obs, acts, obs_next, params, *, tile_r=1024, use_bf16=True,
                epilogue_dtype=None):
    """Equivalent of RandomizedReturnDecomposition.forward(batch, train=True).

    obs, obs_next: (B, N, Dobs) float32;  acts: (B, N, Dacts) float32.
    Returns (rrd_rews_pred (B, N), rrd (B, 1))."""
    B, N, _ = obs.shape
    R = B * N
    hidden = params["w2"].shape[0]

    # Fused layer-1 input (wrapper-side layout plumbing, not kernel compute).
    x = jnp.concatenate(
        [obs, acts, obs - obs_next], axis=-1
    ).reshape(R, -1).astype(jnp.float32)
    d_in = x.shape[-1]
    d_in_pad = pl.cdiv(d_in, LANE) * LANE          # lane-aligned K for layer 1

    # ---- workload-aware row tile (multiple of 128 for the lane-dense layout) --
    r_pad_min = pl.cdiv(R, LANE) * LANE
    tile_r = max(LANE, min(int(tile_r), r_pad_min))
    tile_r = pl.cdiv(tile_r, LANE) * LANE
    # v7x has 2 TensorCores: make sure the "parallel" row axis has >= 2 steps
    # whenever R is big enough, so both cores get work.
    if _is_dual_core() and r_pad_min >= 2 * LANE:
        half = pl.cdiv(pl.cdiv(R, 2), LANE) * LANE
        tile_r = min(tile_r, half)
    r_pad = pl.cdiv(R, tile_r) * tile_r
    grid = (r_pad // tile_r,)

    mm_dtype = jnp.bfloat16 if use_bf16 else jnp.float32
    if epilogue_dtype is None:
        epilogue_dtype = _default_epilogue_dtype() if use_bf16 else jnp.float32

    # Pad rows/features with zeros (padded rows are sliced off before the mean),
    # then transpose so rows live on the lane axis (lane-dense output slab).
    x = jnp.pad(x, ((0, r_pad - R), (0, d_in_pad - d_in)))
    xT = x.T.astype(mm_dtype)                                     # (d_in_pad, r_pad)

    w1T = jnp.pad(params["w1"].T,
                  ((0, 0), (0, d_in_pad - d_in))).astype(mm_dtype)  # (H, d_in_pad)
    w2T = params["w2"].T.astype(mm_dtype)                           # (H, H)
    b1 = params["b1"].reshape(hidden, 1).astype(epilogue_dtype)
    b2 = params["b2"].reshape(hidden, 1).astype(epilogue_dtype)
    w3 = params["w3_row"].reshape(hidden, 1).astype(jnp.float32)
    b3 = params["b3"].reshape(1, 1).astype(jnp.float32)

    pred_pad = pl.pallas_call(
        _rrd_mlp_kernel,
        out_shape=jax.ShapeDtypeStruct((1, r_pad), jnp.float32),
        grid=grid,
        in_specs=[
            pl.BlockSpec((d_in_pad, tile_r), lambda i: (0, i)),    # xT tile
            pl.BlockSpec((hidden, d_in_pad), lambda i: (0, 0)),    # w1T (resident)
            pl.BlockSpec((hidden, 1), lambda i: (0, 0)),           # b1
            pl.BlockSpec((hidden, hidden), lambda i: (0, 0)),      # w2T
            pl.BlockSpec((hidden, 1), lambda i: (0, 0)),           # b2
            pl.BlockSpec((hidden, 1), lambda i: (0, 0)),           # w3 (VPU)
            pl.BlockSpec((1, 1), lambda i: (0, 0)),                # b3
        ],
        out_specs=pl.BlockSpec((1, tile_r), lambda i: (0, i)),     # lane-dense slab
        compiler_params=pltpu.CompilerParams(
            dimension_semantics=("parallel",),
            vmem_limit_bytes=32 * 1024 * 1024),
    )(xT, w1T, b1, w2T, b2, w3, b3)

    rrd_rews_pred = pred_pad[0, :R].reshape(B, N)  # matches .squeeze() on (B,N,1)
    # Per-episode mean in the wrapper (cheap; no dense grouping matmul needed).
    rrd = jnp.mean(rrd_rews_pred, axis=-1, keepdims=True)
    return rrd_rews_pred, rrd


if __name__ == "__main__":
    key = jax.random.PRNGKey(0)
    k_obs, k_acts, k_next, k_param = jax.random.split(key, 4)

    # Small shapes consistent with the module:
    #   sum(obs_dims)=6, sum(acts_dims)=2  ->  mlp_dims = 6*2 + 2 = 14
    B, N, D_OBS, D_ACTS = 2, 8, 6, 2

    obs = jax.random.normal(k_obs, (B, N, D_OBS), jnp.float32)
    acts = jax.random.normal(k_acts, (B, N, D_ACTS), jnp.float32)
    obs_next = jax.random.normal(k_next, (B, N, D_OBS), jnp.float32)

    params = init_params(k_param, D_OBS, D_ACTS, hidden=HIDDEN)

    # Plain-JAX f32 reference (same math as the PyTorch module).
    x_ref = jnp.concatenate([obs, acts, obs - obs_next],
                            axis=-1).reshape(B * N, -1)
    h1 = jnp.maximum(x_ref @ params["w1"] + params["b1"], 0.0)
    h2 = jnp.maximum(h1 @ params["w2"] + params["b2"], 0.0)
    ref_pred = (h2 @ params["w3_row"].T + params["b3"]).reshape(B, N)
    ref_rrd = jnp.mean(ref_pred, axis=-1, keepdims=True)

    # 1) f32 matmul + f32 epilogue path: tight check against the f32 reference.
    pred32, rrd32 = rrd_forward(obs, acts, obs_next, params, use_bf16=False)
    jax.block_until_ready((pred32, rrd32))
    assert pred32.shape == (B, N) and rrd32.shape == (B, 1)
    assert jnp.allclose(pred32, ref_pred, atol=1e-4, rtol=1e-4)
    assert jnp.allclose(rrd32, ref_rrd, atol=1e-4, rtol=1e-4)

    # 2) bf16 matmul path (default, perf; bf16 epilogue on v6e/v7x): loose check.
    pred16, rrd16 = rrd_forward(obs, acts, obs_next, params, use_bf16=True)
    jax.block_until_ready((pred16, rrd16))
    assert pred16.shape == (B, N) and rrd16.shape == (B, 1)
    assert jnp.allclose(pred16, ref_pred, atol=3e-2, rtol=3e-2)
    assert jnp.allclose(rrd16, ref_rrd, atol=3e-2, rtol=3e-2)

    print("KERNEL_OK")
</pallas_src>

<mosaic_0001>
module attributes {stable_mosaic.version = 11 : i64} {
  func.func @_rrd_mlp_kernel(%arg0: i32, %arg1: memref<128x128xf32, #tpu.memory_space<vmem>>, %arg2: memref<256x128xf32, #tpu.memory_space<vmem>>, %arg3: memref<256x1xf32, #tpu.memory_space<vmem>>, %arg4: memref<256x256xf32, #tpu.memory_space<vmem>>, %arg5: memref<256x1xf32, #tpu.memory_space<vmem>>, %arg6: memref<256x1xf32, #tpu.memory_space<vmem>>, %arg7: memref<1x1xf32, #tpu.memory_space<vmem>>, %arg8: memref<1x128xf32, #tpu.memory_space<vmem>>) attributes {dimension_semantics = [#tpu.dimension_semantics<parallel>], iteration_bounds = array<i64: 1>, scalar_prefetch = 0 : i64, scratch_operands = 0 : i64, tpu.core_type = #tpu.core_type<tc>, window_params = [{transform_indices = @transform_0, window_bounds = array<i64: 128, 128>}, {pipeline_mode = #tpu.pipeline_mode<synchronous>, transform_indices = @transform_1, window_bounds = array<i64: 256, 128>}, {pipeline_mode = #tpu.pipeline_mode<synchronous>, transform_indices = @transform_2, window_bounds = array<i64: 256, 1>}, {pipeline_mode = #tpu.pipeline_mode<synchronous>, transform_indices = @transform_3, window_bounds = array<i64: 256, 256>}, {pipeline_mode = #tpu.pipeline_mode<synchronous>, transform_indices = @transform_4, window_bounds = array<i64: 256, 1>}, {pipeline_mode = #tpu.pipeline_mode<synchronous>, transform_indices = @transform_5, window_bounds = array<i64: 256, 1>}, {pipeline_mode = #tpu.pipeline_mode<synchronous>, transform_indices = @transform_6, window_bounds = array<i64: 1, 1>}, {transform_indices = @transform_7, window_bounds = array<i64: 1, 128>}]} {
    %c0 = arith.constant 0 : index
    %c0_0 = arith.constant 0 : index
    %0 = vector.load %arg1[%c0, %c0_0] : memref<128x128xf32, #tpu.memory_space<vmem>>, vector<128x128xf32>
    %c0_1 = arith.constant 0 : index
    %c0_2 = arith.constant 0 : index
    %1 = vector.load %arg2[%c0_1, %c0_2] : memref<256x128xf32, #tpu.memory_space<vmem>>, vector<256x128xf32>
    %cst = arith.constant dense<0.000000e+00> : vector<256x128xf32>
    %2 = tpu.matmul %1, %0, %cst {dimension_numbers = #tpu.dot_dimension_numbers<[1], [0], [0], [1], [0, 0, 1, 1], [], []>} : vector<256x128xf32>, vector<128x128xf32>, vector<256x128xf32> -> vector<256x128xf32>
    %c0_3 = arith.constant 0 : index
    %c0_4 = arith.constant 0 : index
    %3 = vector.load %arg3[%c0_3, %c0_4] : memref<256x1xf32, #tpu.memory_space<vmem>>, vector<256x1xf32>
    %4 = vector.broadcast %3 : vector<256x1xf32> to vector<256x128xf32>
    %5 = arith.addf %2, %4 : vector<256x128xf32>
    %cst_5 = arith.constant 0.000000e+00 : f32
    %6 = vector.broadcast %cst_5 : f32 to vector<256x128xf32>
    %7 = arith.maximumf %5, %6 : vector<256x128xf32>
    %c0_6 = arith.constant 0 : index
    %c0_7 = arith.constant 0 : index
    %8 = vector.load %arg4[%c0_6, %c0_7] : memref<256x256xf32, #tpu.memory_space<vmem>>, vector<256x256xf32>
    %cst_8 = arith.constant dense<0.000000e+00> : vector<256x128xf32>
    %9 = tpu.matmul %8, %7, %cst_8 {dimension_numbers = #tpu.dot_dimension_numbers<[1], [0], [0], [1], [0, 0, 1, 1], [], []>} : vector<256x256xf32>, vector<256x128xf32>, vector<256x128xf32> -> vector<256x128xf32>
    %c0_9 = arith.constant 0 : index
    %c0_10 = arith.constant 0 : index
    %10 = vector.load %arg5[%c0_9, %c0_10] : memref<256x1xf32, #tpu.memory_space<vmem>>, vector<256x1xf32>
    %11 = vector.broadcast %10 : vector<256x1xf32> to vector<256x128xf32>
    %12 = arith.addf %9, %11 : vector<256x128xf32>
    %cst_11 = arith.constant 0.000000e+00 : f32
    %13 = vector.broadcast %cst_11 : f32 to vector<256x128xf32>
    %14 = arith.maximumf %12, %13 : vector<256x128xf32>
    %c0_12 = arith.constant 0 : index
    %c0_13 = arith.constant 0 : index
    %15 = vector.load %arg6[%c0_12, %c0_13] : memref<256x1xf32, #tpu.memory_space<vmem>>, vector<256x1xf32>
    %16 = vector.broadcast %15 : vector<256x1xf32> to vector<256x128xf32>
    %17 = arith.mulf %14, %16 : vector<256x128xf32>
    %cst_14 = arith.constant dense<0.000000e+00> : vector<128xf32>
    %18 = vector.multi_reduction <add>, %17, %cst_14 [0] : vector<256x128xf32> to vector<128xf32>
    %19 = vector.shape_cast %18 : vector<128xf32> to vector<1x128xf32>
    %c0_15 = arith.constant 0 : index
    %c0_16 = arith.constant 0 : index
    %20 = vector.load %arg7[%c0_15, %c0_16] : memref<1x1xf32, #tpu.memory_space<vmem>>, vector<1x1xf32>
    %21 = vector.broadcast %20 : vector<1x1xf32> to vector<1x128xf32>
    %22 = arith.addf %19, %21 : vector<1x128xf32>
    %c0_17 = arith.constant 0 : index
    %c0_18 = arith.constant 0 : index
    %23 = vector.load %arg8[%c0_17, %c0_18] : memref<1x128xf32, #tpu.memory_space<vmem>>, vector<1x128xf32>
    tpu.vector_store %arg8[%c0_17, %c0_18], %22 {strides = array<i32>} : memref<1x128xf32, #tpu.memory_space<vmem>>, vector<1x128xf32>,
    return
  }
  func.func @transform_0(%arg0: i32) -> (i32, i32) {
    %c0_i32 = arith.constant 0 : i32
    %c0_i32_0 = arith.constant 0 : i32
    return %c0_i32, %arg0 : i32, i32
  }
  func.func @transform_1(%arg0: i32) -> (i32, i32) {
    %c0_i32 = arith.constant 0 : i32
    %c0_i32_0 = arith.constant 0 : i32
    %c0_i32_1 = arith.constant 0 : i32
    return %c0_i32, %c0_i32_0 : i32, i32
  }
  func.func @transform_2(%arg0: i32) -> (i32, i32) {
    %c0_i32 = arith.constant 0 : i32
    %c0_i32_0 = arith.constant 0 : i32
    %c0_i32_1 = arith.constant 0 : i32
    return %c0_i32, %c0_i32_0 : i32, i32
  }
  func.func @transform_3(%arg0: i32) -> (i32, i32) {
    %c0_i32 = arith.constant 0 : i32
    %c0_i32_0 = arith.constant 0 : i32
    %c0_i32_1 = arith.constant 0 : i32
    return %c0_i32, %c0_i32_0 : i32, i32
  }
  func.func @transform_4(%arg0: i32) -> (i32, i32) {
    %c0_i32 = arith.constant 0 : i32
    %c0_i32_0 = arith.constant 0 : i32
    %c0_i32_1 = arith.constant 0 : i32
    return %c0_i32, %c0_i32_0 : i32, i32
  }
  func.func @transform_5(%arg0: i32) -> (i32, i32) {
    %c0_i32 = arith.constant 0 : i32
    %c0_i32_0 = arith.constant 0 : i32
    %c0_i32_1 = arith.constant 0 : i32
    return %c0_i32, %c0_i32_0 : i32, i32
  }
  func.func @transform_6(%arg0: i32) -> (i32, i32) {
    %c0_i32 = arith.constant 0 : i32
    %c0_i32_0 = arith.constant 0 : i32
    %c0_i32_1 = arith.constant 0 : i32
    return %c0_i32, %c0_i32_0 : i32, i32
  }
  func.func @transform_7(%arg0: i32) -> (i32, i32) {
    %c0_i32 = arith.constant 0 : i32
    %c0_i32_0 = arith.constant 0 : i32
    return %c0_i32, %arg0 : i32, i32
  }
}

</mosaic_0001>

<bundles_post_ra>
// kernel: tpu_custom_call.1
= control target key start
LH: loop header
LB: loop body
LE: loop exit
PB: predicated region body
PF: predicated region fallthrough
CT: control target
= control target key end

     0   :  { %s2465_s0 = inlined_call_operand.hbm [shape: f32[128,128], index: 0, kind: input, shape index: {}]   ;;  %s2466_s1 = inlined_call_operand.vmem [shape: f32[256,128], index: 1, kind: input, shape index: {}]   ;;  %s2467_s2 = inlined_call_operand.vmem [shape: f32[256,1], index: 2, kind: input, shape index: {}]   ;;  %s2468_s3 = inlined_call_operand.vmem [shape: f32[256,256], index: 3, kind: input, shape index: {}]   ;;  %s2469_s4 = inlined_call_operand.vmem [shape: f32[256,1], index: 4, kind: input, shape index: {}]   ;;  %s2470_s5 = inlined_call_operand.vmem [shape: f32[256,1], index: 5, kind: input, shape index: {}]   ;;  %s2471_s6 = inlined_call_operand.<no memory space> [shape: f32[1,1], index: 6, kind: input, shape index: {}]   ;;  %s2472_s7 = inlined_call_operand.hbm [shape: f32[1,128], index: 7, kind: output, shape index: {}]  }
   0x1   :  { %v12_v0 = vstv %s2471_s6 }
   0x2   :  { %13 = vst [vmem:[#allocation2] sm:$0x1] %v12_v0 }
   0x3   :  { %14 = vsyncpa [#allocation4], 0 }
   0x4   :  { %15 = vsyncpa [#allocation5], 0  ;;  %s1637_s26 = smov [#allocation3]   ;;  %s1589_s30 = scalar_lea.hbm %s2465_s0, 2048 }
   0x5   :  { %s21_s27 = sshll.u32 %s1637_s26, 4  ;;  %p1590_p0 = scmp.ne.s32.totalorder %s2465_s0, %s1589_s30  ;;  %s22_s27 = int_to_ptr.vmem [resolvable:$true] %s21_s27 }
   0x6   :  { %p1593_p1 = scmp.lt.u32.totalorder %s1589_s30, %s2465_s0 }
   0x8   :  { %p1595_p2 = pnand %p1593_p1, %p1590_p0 }
   0xa   :  { %1598 = shalt.err (!%p1595_p2)
}
   0xb   :  { %s1599_s6 = scalar_lea.vmem %s22_s27, 2048  ;;  %p1604_p4 = scmp.lt.s32.totalorder %s22_s27, %s22_s27 }
   0xc   :  { %p1600_p3 = scmp.ne.s32.totalorder %s22_s27, %s1599_s6  ;;  %p1605_p5 = scmp.lt.s32.totalorder %s1599_s6, %s1599_s6 }
   0xe   :  { %p1606_p6 = por %p1605_p5, %p1604_p4 }
  0x10   :  { %p1607_p7 = pnand %p1606_p6, %p1600_p3 }
  0x12   :  { %1610 = shalt.err (!%p1607_p7)
}
  0x13   :  { %s1638_s12 = smov 128   ;;  %s1639_s13 = smov 8  }
  0x14   :  { %27 = dma.hbm_to_vmem [thread:$0]  %s2465_s0, 2048, %s22_s27, [#allocation4], %s1638_s12, %s1638_s12, %s1639_s13  }
  0x15   :  { %1633 = dma.done.wait [#allocation4], 2048  }
  0x16   :  { %1634 = vsyncadd [#allocation4], 4294965248  ;;  %v1640_v1 = vmov 0   ;;  %v93_v2 = vld [vmem:[%s2467_s2 + $0x10] sm:$0xff]  ;;  %v91_v3 = vld [vmem:[%s2467_s2] sm:$0xff] }
  0x17   :  { %1588 = vset.pattern.permute.xlu1 %v1640_v1  ;;  %1587 = vset.pattern.permute.xlu0 %v1640_v1  ;;  %v43_v4 = vld [vmem:[#allocation3] sm:$0xff]  ;;  %v44_v5 = vld [vmem:[#allocation3 + $0x8] sm:$0xff]  ;;  %v94_v7 = vld [vmem:[%s2467_s2 + $0x18] sm:$0xff] }
  0x18   :  { %135 = vperm.xlu1 %1588, %v93_v2   ;;  %125 = vperm.xlu0 %1587, %v91_v3   ;;  %v1469_v6 = vpack.c.bf16 %v44_v5, %v43_v4  ;;  %v45_v8 = vld [vmem:[#allocation3 + $0x10] sm:$0xff]  ;;  %v46_v9 = vld [vmem:[#allocation3 + $0x18] sm:$0xff]  ;;  %v92_v10 = vld [vmem:[%s2467_s2 + $0x8] sm:$0xff] }
  0x19   :  { %v1473_v11 = vpack.c.bf16 %v46_v9, %v45_v8  ;;  %v47_v12 = vld [vmem:[#allocation3 + $0x20] sm:$0xff]  ;;  %v48_v13 = vld [vmem:[#allocation3 + $0x28] sm:$0xff]  ;;  %v49_v17 = vld [vmem:[#allocation3 + $0x30] sm:$0xff] }
  0x1a   :  { %1470 = vmatprep.subr.bf16.mxu0 %v1469_v6  ;;  %v96_v14 = vld [vmem:[%s2467_s2 + $0x28] sm:$0xff]  ;;  %v1477_v15 = vpack.c.bf16 %v48_v13, %v47_v12  ;;  %v95_v16 = vld [vmem:[%s2467_s2 + $0x20] sm:$0xff]  ;;  %v98_v19 = vld [vmem:[%s2467_s2 + $0x38] sm:$0xff] }
  0x1b   :  { %1472 = vmatpush3.bf16.msra.mxu0 %v1469_v6  ;;  %v50_v18 = vld [vmem:[#allocation3 + $0x38] sm:$0xff]  ;;  %v97_v20 = vld [vmem:[%s2467_s2 + $0x30] sm:$0xff]  ;;  %v51_v22 = vld [vmem:[#allocation3 + $0x40] sm:$0xff] }
  0x1c   :  { %140 = vperm.xlu1 %1588, %v94_v7   ;;  %130 = vperm.xlu0 %1587, %v92_v10   ;;  %v1481_v21 = vpack.c.bf16 %v50_v18, %v49_v17  ;;  %v52_v23 = vld [vmem:[#allocation3 + $0x48] sm:$0xff]  ;;  %v59_v24 = vld [vmem:[%s2466_s1] sm:$0xff]  ;;  %v53_v28 = vld [vmem:[#allocation3 + $0x50] sm:$0xff] }
  0x1d   :  { %1474 = vmatprep.subr.bf16.mxu0 %v1473_v11  ;;  %1421 = vmatprep.mubr.f32.mxu0 %v59_v24  ;;  %v100_v25 = vld [vmem:[%s2467_s2 + $0x48] sm:$0xff]  ;;  %v1485_v26 = vpack.c.bf16 %v52_v23, %v51_v22  ;;  %v99_v27 = vld [vmem:[%s2467_s2 + $0x40] sm:$0xff]  ;;  %v102_v30 = vld [vmem:[%s2467_s2 + $0x58] sm:$0xff] }
  0x1e   :  { %v54_v29 = vld [vmem:[#allocation3 + $0x58] sm:$0xff]  ;;  %v101_v32 = vld [vmem:[%s2467_s2 + $0x50] sm:$0xff]  ;;  %v55_v33 = vld [vmem:[#allocation3 + $0x60] sm:$0xff] }
  0x1f   :  { %1476 = vmatpush3.bf16.msra.mxu0 %v1473_v11  ;;  %v1489_v31 = vpack.c.bf16 %v54_v29, %v53_v28  ;;  %v56_v34 = vld [vmem:[#allocation3 + $0x68] sm:$0xff]  ;;  %v103_v37 = vld [vmem:[%s2467_s2 + $0x60] sm:$0xff]  ;;  %v57_v38 = vld [vmem:[#allocation3 + $0x70] sm:$0xff] }
  0x20   :  { %150 = vperm.xlu1 %1588, %v96_v14   ;;  %145 = vperm.xlu0 %1587, %v95_v16   ;;  %v104_v35 = vld [vmem:[%s2467_s2 + $0x68] sm:$0xff]  ;;  %v1493_v36 = vpack.c.bf16 %v56_v34, %v55_v33  ;;  %v58_v39 = vld [vmem:[#allocation3 + $0x78] sm:$0xff]  ;;  %v105_v42 = vld [vmem:[%s2467_s2 + $0x70] sm:$0xff] }
  0x21   :  { %1478 = vmatprep.subr.bf16.mxu0 %v1477_v15  ;;  %v106_v40 = vld [vmem:[%s2467_s2 + $0x78] sm:$0xff]  ;;  %v1497_v41 = vpack.c.bf16 %v58_v39, %v57_v38  ;;  %v108_v43 = vld [vmem:[%s2467_s2 + $0x88] sm:$0xff]  ;;  %v107_v44 = vld [vmem:[%s2467_s2 + $0x80] sm:$0xff] }
  0x22   :  { %v60_v45 = vld [vmem:[%s2466_s1 + $0x8] sm:$0xff]  ;;  %v110_v46 = vld [vmem:[%s2467_s2 + $0x98] sm:$0xff]  ;;  %v61_v47 = vld [vmem:[%s2466_s1 + $0x10] sm:$0xff] }
  0x23   :  { %1480 = vmatpush3.bf16.msra.mxu0 %v1477_v15  ;;  %v109_v48 = vld [vmem:[%s2467_s2 + $0x90] sm:$0xff]  ;;  %v62_v49 = vld [vmem:[%s2466_s1 + $0x18] sm:$0xff]  ;;  %v112_v50 = vld [vmem:[%s2467_s2 + $0xa8] sm:$0xff] }
  0x24   :  { %160 = vperm.xlu1 %1588, %v98_v19   ;;  %155 = vperm.xlu0 %1587, %v97_v20   ;;  %v63_v51 = vld [vmem:[%s2466_s1 + $0x20] sm:$0xff]  ;;  %v64_v53 = vld [vmem:[%s2466_s1 + $0x28] sm:$0xff]  ;;  %v114_v54 = vld [vmem:[%s2467_s2 + $0xb8] sm:$0xff] }
  0x25   :  { %1482 = vmatprep.subr.bf16.mxu0 %v1481_v21  ;;  %v111_v52 = vld [vmem:[%s2467_s2 + $0xa0] sm:$0xff]  ;;  %v65_v55 = vld [vmem:[%s2466_s1 + $0x30] sm:$0xff]  ;;  %v66_v57 = vld [vmem:[%s2466_s1 + $0x38] sm:$0xff] }
  0x26   :  { %v113_v56 = vld [vmem:[%s2467_s2 + $0xb0] sm:$0xff]  ;;  %v116_v58 = vld [vmem:[%s2467_s2 + $0xc8] sm:$0xff]  ;;  %v67_v59 = vld [vmem:[%s2466_s1 + $0x40] sm:$0xff] }
  0x27   :  { %1484 = vmatpush3.bf16.msra.mxu0 %v1481_v21  ;;  %v115_v60 = vld [vmem:[%s2467_s2 + $0xc0] sm:$0xff]  ;;  %v68_v61 = vld [vmem:[%s2466_s1 + $0x48] sm:$0xff]  ;;  %v118_v62 = vld [vmem:[%s2467_s2 + $0xd8] sm:$0xff] }
  0x28   :  { %170 = vperm.xlu1 %1588, %v100_v25   ;;  %165 = vperm.xlu0 %1587, %v99_v27   ;;  %v69_v63 = vld [vmem:[%s2466_s1 + $0x50] sm:$0xff]  ;;  %v70_v1 = vld [vmem:[%s2466_s1 + $0x58] sm:$0xff]  ;;  %v120_v2 = vld [vmem:[%s2467_s2 + $0xe8] sm:$0xff] }
  0x29   :  { %1486 = vmatprep.subr.bf16.mxu0 %v1485_v26  ;;  %v117_v0 = vld [vmem:[%s2467_s2 + $0xd0] sm:$0xff]  ;;  %v71_v3 = vld [vmem:[%s2466_s1 + $0x60] sm:$0xff]  ;;  %v72_v5 = vld [vmem:[%s2466_s1 + $0x68] sm:$0xff] }
  0x2a   :  { %v119_v4 = vld [vmem:[%s2467_s2 + $0xe0] sm:$0xff]  ;;  %v122_v6 = vld [vmem:[%s2467_s2 + $0xf8] sm:$0xff]  ;;  %v73_v7 = vld [vmem:[%s2466_s1 + $0x70] sm:$0xff] }
  0x2b   :  { %1488 = vmatpush3.bf16.msra.mxu0 %v1485_v26  ;;  %v121_v8 = vld [vmem:[%s2467_s2 + $0xf0] sm:$0xff]  ;;  %v74_v9 = vld [vmem:[%s2466_s1 + $0x78] sm:$0xff]  ;;  %v605_v10 = vld [vmem:[%s2469_s4 + $0x8] sm:$0xff] }
  0x2c   :  { %180 = vperm.xlu1 %1588, %v102_v30   ;;  %175 = vperm.xlu0 %1587, %v101_v32   ;;  %v75_v11 = vld [vmem:[%s2466_s1 + $0x80] sm:$0xff]  ;;  %v76_v13 = vld [vmem:[%s2466_s1 + $0x88] sm:$0xff]  ;;  %v607_v14 = vld [vmem:[%s2469_s4 + $0x18] sm:$0xff] }
  0x2d   :  { %1490 = vmatprep.subr.bf16.mxu0 %v1489_v31  ;;  %v604_v12 = vld [vmem:[%s2469_s4] sm:$0xff]  ;;  %v77_v15 = vld [vmem:[%s2466_s1 + $0x90] sm:$0xff]  ;;  %v78_v17 = vld [vmem:[%s2466_s1 + $0x98] sm:$0xff] }
  0x2e   :  { %v606_v16 = vld [vmem:[%s2469_s4 + $0x10] sm:$0xff]  ;;  %v609_v18 = vld [vmem:[%s2469_s4 + $0x28] sm:$0xff]  ;;  %v79_v19 = vld [vmem:[%s2466_s1 + $0xa0] sm:$0xff] }
  0x2f   :  { %1492 = vmatpush3.bf16.msra.mxu0 %v1489_v31  ;;  %v608_v20 = vld [vmem:[%s2469_s4 + $0x20] sm:$0xff]  ;;  %v80_v21 = vld [vmem:[%s2466_s1 + $0xa8] sm:$0xff]  ;;  %v611_v22 = vld [vmem:[%s2469_s4 + $0x38] sm:$0xff] }
  0x30   :  { %190 = vperm.xlu1 %1588, %v104_v35   ;;  %185 = vperm.xlu0 %1587, %v103_v37   ;;  %v81_v23 = vld [vmem:[%s2466_s1 + $0xb0] sm:$0xff]  ;;  %v82_v25 = vld [vmem:[%s2466_s1 + $0xb8] sm:$0xff]  ;;  %v613_v26 = vld [vmem:[%s2469_s4 + $0x48] sm:$0xff] }
  0x31   :  { %1494 = vmatprep.subr.bf16.mxu0 %v1493_v36  ;;  %v610_v24 = vld [vmem:[%s2469_s4 + $0x30] sm:$0xff]  ;;  %v83_v27 = vld [vmem:[%s2466_s1 + $0xc0] sm:$0xff]  ;;  %v84_v29 = vld [vmem:[%s2466_s1 + $0xc8] sm:$0xff] }
  0x32   :  { %v612_v28 = vld [vmem:[%s2469_s4 + $0x40] sm:$0xff]  ;;  %v615_v30 = vld [vmem:[%s2469_s4 + $0x58] sm:$0xff]  ;;  %v85_v31 = vld [vmem:[%s2466_s1 + $0xd0] sm:$0xff] }
  0x33   :  { %1496 = vmatpush3.bf16.msra.mxu0 %v1493_v36  ;;  %v614_v32 = vld [vmem:[%s2469_s4 + $0x50] sm:$0xff]  ;;  %v86_v33 = vld [vmem:[%s2466_s1 + $0xd8] sm:$0xff]  ;;  %v617_v34 = vld [vmem:[%s2469_s4 + $0x68] sm:$0xff] }
  0x34   :  { %200 = vperm.xlu1 %1588, %v106_v40   ;;  %195 = vperm.xlu0 %1587, %v105_v42   ;;  %v87_v35 = vld [vmem:[%s2466_s1 + $0xe0] sm:$0xff]  ;;  %v88_v37 = vld [vmem:[%s2466_s1 + $0xe8] sm:$0xff]  ;;  %v619_v38 = vld [vmem:[%s2469_s4 + $0x78] sm:$0xff] }
  0x35   :  { %1498 = vmatprep.subr.bf16.mxu0 %v1497_v41  ;;  %v616_v36 = vld [vmem:[%s2469_s4 + $0x60] sm:$0xff]  ;;  %v89_v39 = vld [vmem:[%s2466_s1 + $0xf0] sm:$0xff]  ;;  %v621_v42 = vld [vmem:[%s2469_s4 + $0x88] sm:$0xff] }
  0x36   :  { %v618_v40 = vld [vmem:[%s2469_s4 + $0x70] sm:$0xff] }
  0x37   :  { %1500 = vmatpush3.bf16.msra.mxu0 %v1497_v41  ;;  %v90_v41 = vld [vmem:[%s2466_s1 + $0xf8] sm:$0xff] }
  0x38   :  { %210 = vperm.xlu1 %1588, %v108_v43   ;;  %205 = vperm.xlu0 %1587, %v107_v44   ;;  %v620_v43 = vld [vmem:[%s2469_s4 + $0x80] sm:$0xff]  ;;  %v623_v44 = vld [vmem:[%s2469_s4 + $0x98] sm:$0xff] }
  0x3a   :  { %1422 = vmatmul.mubr.f32.vlgmr.msra.gmra.mrb[0].mxu0 %v60_v45  ;;  %v622_v45 = vld [vmem:[%s2469_s4 + $0x90] sm:$0xff] }
  0x3b   :  { %1424 = vmatprep.mubr.f32.mxu0 %v61_v47  ;;  %v624_v47 = vld [vmem:[%s2469_s4 + $0xa0] sm:$0xff] }
  0x3c   :  { %220 = vperm.xlu1 %1588, %v110_v46   ;;  %215 = vperm.xlu0 %1587, %v109_v48   ;;  %v625_v46 = vld [vmem:[%s2469_s4 + $0xa8] sm:$0xff]  ;;  %v627_v48 = vld [vmem:[%s2469_s4 + $0xb8] sm:$0xff] }
  0x3e   :  { %1425 = vmatmul.mubr.f32.gmra.mrb[2].mxu0 %v62_v49  ;;  %v626_v49 = vld [vmem:[%s2469_s4 + $0xb0] sm:$0xff] }
  0x3f   :  { %1427 = vmatprep.mubr.f32.mxu0 %v63_v51  ;;  %v628_v51 = vld [vmem:[%s2469_s4 + $0xc0] sm:$0xff] }
  0x40   :  { %230 = vperm.xlu1 %1588, %v112_v50   ;;  %225 = vperm.xlu0 %1587, %v111_v52   ;;  %v629_v50 = vld [vmem:[%s2469_s4 + $0xc8] sm:$0xff]  ;;  %v631_v52 = vld [vmem:[%s2469_s4 + $0xd8] sm:$0xff] }
  0x42   :  { %1428 = vmatmul.mubr.f32.gmra.mrb[4].mxu0 %v64_v53  ;;  %v630_v53 = vld [vmem:[%s2469_s4 + $0xd0] sm:$0xff] }
  0x43   :  { %1430 = vmatprep.mubr.f32.mxu0 %v65_v55  ;;  %v632_v55 = vld [vmem:[%s2469_s4 + $0xe0] sm:$0xff] }
  0x44   :  { %240 = vperm.xlu1 %1588, %v114_v54   ;;  %235 = vperm.xlu0 %1587, %v113_v56   ;;  %v1053_v54 = vld [vmem:[%s2470_s5] sm:$0xff]  ;;  %v1055_v56 = vld [vmem:[%s2470_s5 + $0x10] sm:$0xff] }
  0x46   :  { %1431 = vmatmul.mubr.f32.gmra.mrb[6].mxu0 %v66_v57  ;;  %v1054_v57 = vld [vmem:[%s2470_s5 + $0x8] sm:$0xff] }
  0x47   :  { %1433 = vmatprep.mubr.f32.mxu0 %v67_v59  ;;  %v1641_v59 = vmov 0.0|0.0  }
  0x48   :  { %250 = vperm.xlu1 %1588, %v116_v58   ;;  %245 = vperm.xlu0 %1587, %v115_v60   ;;  %v1057_v58 = vld [vmem:[%s2470_s5 + $0x20] sm:$0xff]  ;;  %v1056_v60 = vld [vmem:[%s2470_s5 + $0x18] sm:$0xff] }
  0x49   :  { %1501 = vmatprep.subr.bf16.mxu0 %v1641_v59  ;;  %1549 = vmatprep.subr.bf16.mxu1 %v1641_v59 }
  0x4a   :  { %1434 = vmatmul.mubr.f32.gmra.mrb[8].mxu0 %v68_v61  ;;  %v1059_v61 = vld [vmem:[%s2470_s5 + $0x30] sm:$0xff] }
  0x4b   :  { %1436 = vmatprep.mubr.f32.mxu0 %v69_v63  ;;  %v1061_v63 = vld [vmem:[%s2470_s5 + $0x40] sm:$0xff] }
  0x4c   :  { %260 = vperm.xlu1 %1588, %v118_v62   ;;  %255 = vperm.xlu0 %1587, %v117_v0   ;;  %v1058_v62 = vld [vmem:[%s2470_s5 + $0x28] sm:$0xff]  ;;  %v1060_v0 = vld [vmem:[%s2470_s5 + $0x38] sm:$0xff] }
  0x4e   :  { %1437 = vmatmul.mubr.f32.gmra.mrb[10].mxu0 %v70_v1  ;;  %v1063_v1 = vld [vmem:[%s2470_s5 + $0x50] sm:$0xff] }
  0x4f   :  { %1439 = vmatprep.mubr.f32.mxu0 %v71_v3  ;;  %v1065_v3 = vld [vmem:[%s2470_s5 + $0x60] sm:$0xff] }
  0x50   :  { %270 = vperm.xlu1 %1588, %v120_v2   ;;  %265 = vperm.xlu0 %1587, %v119_v4   ;;  %v1062_v2 = vld [vmem:[%s2470_s5 + $0x48] sm:$0xff]  ;;  %v1064_v4 = vld [vmem:[%s2470_s5 + $0x58] sm:$0xff] }
  0x52   :  { %1440 = vmatmul.mubr.f32.gmra.mrb[12].mxu0 %v72_v5  ;;  %v1067_v5 = vld [vmem:[%s2470_s5 + $0x70] sm:$0xff] }
  0x53   :  { %1442 = vmatprep.mubr.f32.mxu0 %v73_v7  ;;  %v1069_v7 = vld [vmem:[%s2470_s5 + $0x80] sm:$0xff] }
  0x54   :  { %280 = vperm.xlu1 %1588, %v122_v6   ;;  %275 = vperm.xlu0 %1587, %v121_v8   ;;  %v1066_v6 = vld [vmem:[%s2470_s5 + $0x68] sm:$0xff]  ;;  %v1068_v8 = vld [vmem:[%s2470_s5 + $0x78] sm:$0xff] }
  0x56   :  { %1443 = vmatmul.mubr.f32.gmra.mrb[14].mxu0 %v74_v9  ;;  %v1071_v9 = vld [vmem:[%s2470_s5 + $0x90] sm:$0xff] }
  0x57   :  { %1445 = vmatprep.mubr.f32.mxu0 %v75_v11  ;;  %v1073_v11 = vld [vmem:[%s2470_s5 + $0xa0] sm:$0xff] }
  0x58   :  { %643 = vperm.xlu1 %1588, %v605_v10   ;;  %638 = vperm.xlu0 %1587, %v604_v12   ;;  %v1070_v10 = vld [vmem:[%s2470_s5 + $0x88] sm:$0xff]  ;;  %v1072_v12 = vld [vmem:[%s2470_s5 + $0x98] sm:$0xff] }
  0x5a   :  { %1446 = vmatmul.mubr.f32.gmra.mrb[16].mxu0 %v76_v13  ;;  %v1075_v13 = vld [vmem:[%s2470_s5 + $0xb0] sm:$0xff] }
  0x5b   :  { %1448 = vmatprep.mubr.f32.mxu0 %v77_v15  ;;  %v1077_v15 = vld [vmem:[%s2470_s5 + $0xc0] sm:$0xff] }
  0x5c   :  { %653 = vperm.xlu1 %1588, %v607_v14   ;;  %648 = vperm.xlu0 %1587, %v606_v16   ;;  %v1074_v14 = vld [vmem:[%s2470_s5 + $0xa8] sm:$0xff]  ;;  %v1076_v16 = vld [vmem:[%s2470_s5 + $0xb8] sm:$0xff] }
  0x5e   :  { %1449 = vmatmul.mubr.f32.gmra.mrb[18].mxu0 %v78_v17  ;;  %v1079_v17 = vld [vmem:[%s2470_s5 + $0xd0] sm:$0xff] }
  0x5f   :  { %1451 = vmatprep.mubr.f32.mxu0 %v79_v19  ;;  %v1080_v19 = vld [vmem:[%s2470_s5 + $0xd8] sm:$0xff] }
  0x60   :  { %663 = vperm.xlu1 %1588, %v609_v18   ;;  %658 = vperm.xlu0 %1587, %v608_v20   ;;  %v1078_v18 = vld [vmem:[%s2470_s5 + $0xc8] sm:$0xff] }
  0x61   :  { %v633_v20 = vld [vmem:[%s2469_s4 + $0xe8] sm:$0xff] }
  0x62   :  { %1452 = vmatmul.mubr.f32.gmra.mrb[20].mxu0 %v80_v21  ;;  %v1081_v21 = vld [vmem:[%s2470_s5 + $0xe0] sm:$0xff] }
  0x63   :  { %1454 = vmatprep.mubr.f32.mxu0 %v81_v23  ;;  %v1082_v23 = vld [vmem:[%s2470_s5 + $0xe8] sm:$0xff] }
  0x64   :  { %673 = vperm.xlu1 %1588, %v611_v22   ;;  %668 = vperm.xlu0 %1587, %v610_v24   ;;  %v634_v22 = vld [vmem:[%s2469_s4 + $0xf0] sm:$0xff]  ;;  %v635_v24 = vld [vmem:[%s2469_s4 + $0xf8] sm:$0xff] }
  0x66   :  { %1455 = vmatmul.mubr.f32.gmra.mrb[22].mxu0 %v82_v25  ;;  %v1084_v25 = vld [vmem:[%s2470_s5 + $0xf8] sm:$0xff] }
  0x67   :  { %1457 = vmatprep.mubr.f32.mxu0 %v83_v27  ;;  %v565_v27 = vld [vmem:[%s2468_s3 + $0xc8] sm:$0xff] }
  0x68   :  { %683 = vperm.xlu1 %1588, %v613_v26   ;;  %678 = vperm.xlu0 %1587, %v612_v28   ;;  %v1083_v26 = vld [vmem:[%s2470_s5 + $0xf0] sm:$0xff]  ;;  %v541_v28 = vld [vmem:[%s2468_s3 + $0x8] sm:$0xff] }
  0x69   :  { %920 = vmatprep.mubr.f32.mxu1 %v565_v27 }
  0x6a   :  { %1458 = vmatmul.mubr.f32.gmra.mrb[24].mxu0 %v84_v29  ;;  %v1314_v29 = vld [vmem:[#allocation2] sm:$0x1] }
  0x6b   :  { %1460 = vmatprep.mubr.f32.mxu0 %v85_v31 }
  0x6c   :  { %693 = vperm.xlu1 %1588, %v615_v30   ;;  %688 = vperm.xlu0 %1587, %v614_v32  }
  0x6e   :  { %1461 = vmatmul.mubr.f32.gmra.mrb[26].mxu0 %v86_v33 }
  0x6f   :  { %1463 = vmatprep.mubr.f32.mxu0 %v87_v35 }
  0x70   :  { %703 = vperm.xlu1 %1588, %v617_v34   ;;  %698 = vperm.xlu0 %1587, %v616_v36  }
  0x72   :  { %1464 = vmatmul.mubr.f32.gmra.mrb[28].mxu0 %v88_v37 }
  0x73   :  { %1466 = vmatprep.mubr.f32.mxu0 %v89_v39 }
  0x74   :  { %713 = vperm.xlu1 %1588, %v619_v38   ;;  %708 = vperm.xlu0 %1587, %v618_v40  }
  0x76   :  { %1467 = vmatmul.mubr.f32.gmra.mrb[30].mxu0 %v90_v41 }
  0x77   :  { %860 = vmatprep.mubr.f32.mxu0 %v541_v28 }
  0x78   :  { %723 = vperm.xlu1 %1588, %v621_v42   ;;  %718 = vperm.xlu0 %1587, %v620_v43  }
  0x7c   :  { %733 = vperm.xlu1 %1588, %v623_v44   ;;  %728 = vperm.xlu0 %1587, %v622_v45  }
  0x80   :  { %743 = vperm.xlu1 %1588, %v625_v46   ;;  %738 = vperm.xlu0 %1587, %v624_v47  }
  0x84   :  { %753 = vperm.xlu1 %1588, %v627_v48   ;;  %748 = vperm.xlu0 %1587, %v626_v49  }
  0x88   :  { %763 = vperm.xlu1 %1588, %v629_v50   ;;  %758 = vperm.xlu0 %1587, %v628_v51  }
  0x8c   :  { %773 = vperm.xlu1 %1588, %v631_v52   ;;  %768 = vperm.xlu0 %1587, %v630_v53  }
  0x90   :  { %1087 = vperm.xlu1 %1588, %v1053_v54   ;;  %778 = vperm.xlu0 %1587, %v632_v55  }
  0x94   :  { %1097 = vperm.xlu1 %1588, %v1055_v56   ;;  %1092 = vperm.xlu0 %1587, %v1054_v57  }
  0x97   :  { %v136_v30 = vpop.permute.xlu1 %135  ;;  %v126_v31 = vpop.permute.xlu0 %125 }
  0x98   :  { %1107 = vperm.xlu1 %1588, %v1057_v58   ;;  %1102 = vperm.xlu0 %1587, %v1056_v60  }
  0x9b   :  { %v141_v32 = vpop.permute.xlu1 %140  ;;  %v131_v33 = vpop.permute.xlu0 %130 }
  0x9c   :  { %1117 = vperm.xlu1 %1588, %v1059_v61   ;;  %1112 = vperm.xlu0 %1587, %v1058_v62  }
  0x9f   :  { %v151_v34 = vpop.permute.xlu1 %150  ;;  %v146_v35 = vpop.permute.xlu0 %145 }
  0xa0   :  { %1127 = vperm.xlu1 %1588, %v1061_v63   ;;  %1122 = vperm.xlu0 %1587, %v1060_v0  }
  0xa3   :  { %v161_v36 = vpop.permute.xlu1 %160  ;;  %v156_v37 = vpop.permute.xlu0 %155 }
  0xa4   :  { %1137 = vperm.xlu1 %1588, %v1063_v1   ;;  %1132 = vperm.xlu0 %1587, %v1062_v2  }
  0xa7   :  { %v171_v38 = vpop.permute.xlu1 %170  ;;  %v166_v39 = vpop.permute.xlu0 %165 }
  0xa8   :  { %1147 = vperm.xlu1 %1588, %v1065_v3   ;;  %1142 = vperm.xlu0 %1587, %v1064_v4  }
  0xab   :  { %v181_v40 = vpop.permute.xlu1 %180  ;;  %v176_v42 = vpop.permute.xlu0 %175 }
  0xac   :  { %1157 = vperm.xlu1 %1588, %v1067_v5   ;;  %1152 = vperm.xlu0 %1587, %v1066_v6  }
  0xaf   :  { %v191_v51 = vpop.permute.xlu1 %190  ;;  %v186_v54 = vpop.permute.xlu0 %185 }
  0xb0   :  { %1167 = vperm.xlu1 %1588, %v1069_v7   ;;  %1162 = vperm.xlu0 %1587, %v1068_v8  }
  0xb3   :  { %v201_v0 = vpop.permute.xlu1 %200  ;;  %v196_v3 = vpop.permute.xlu0 %195 }
  0xb4   :  { %1177 = vperm.xlu1 %1588, %v1071_v9   ;;  %1172 = vperm.xlu0 %1587, %v1070_v10  }
  0xb8   :  { %1187 = vperm.xlu1 %1588, %v1073_v11   ;;  %1182 = vperm.xlu0 %1587, %v1072_v12  }
  0xbc   :  { %1197 = vperm.xlu1 %1588, %v1075_v13   ;;  %1192 = vperm.xlu0 %1587, %v1074_v14   ;;  %v211_v13 = vpop.permute.xlu1 %210 }
  0xc0   :  { %1207 = vperm.xlu1 %1588, %v1077_v15   ;;  %1202 = vperm.xlu0 %1587, %v1076_v16   ;;  %v206_v16 = vpop.permute.xlu0 %205 }
  0xc4   :  { %1217 = vperm.xlu1 %1588, %v1079_v17   ;;  %1212 = vperm.xlu0 %1587, %v1078_v18   ;;  %v216_v28 = vpop.permute.xlu0 %215 }
  0xc8   :  { %1222 = vperm.xlu1 %1588, %v1080_v19   ;;  %783 = vperm.xlu0 %1587, %v633_v20  }
  0xcc   :  { %1227 = vperm.xlu1 %1588, %v1081_v21   ;;  %788 = vperm.xlu0 %1587, %v634_v22  }
  0xd0   :  { %1232 = vperm.xlu1 %1588, %v1082_v23   ;;  %793 = vperm.xlu0 %1587, %v635_v24  }
  0xd4   :  { %1242 = vperm.xlu1 %1588, %v1084_v25   ;;  %1237 = vperm.xlu0 %1587, %v1083_v26   ;;  %v221_v25 = vpop.permute.xlu1 %220 }
  0xd8   :  { %1317 = vperm.xlu0 %1587, %v1314_v29  }
 0x10d   :  { %v1423_v41 = vpop.f32.mrb[0].mxu0 }
 0x10e   :  { %v355_v43 = vadd.f32 %v1423_v41, %v131_v33  ;;  %v349_v44 = vpop.f32.mrb[1].mxu0  ;;  %v226_v41 = vpop.permute.xlu0 %225 }
 0x10f   :  { %v350_v45 = vadd.f32 %v349_v44, %v126_v31 }
 0x110   :  { %v509_v46 = vmax.f32 %v355_v43, 0.0 }
 0x111   :  { %v508_v47 = vmax.f32 %v350_v45, 0.0  ;;  %v1426_v48 = vpop.f32.mrb[2].mxu0 }
 0x112   :  { %v365_v49 = vadd.f32 %v1426_v48, %v141_v32  ;;  %v359_v50 = vpop.f32.mrb[3].mxu0 }
 0x113   :  { %v1502_v52 = vpack.c.bf16 %v509_v46, %v508_v47  ;;  %v360_v53 = vadd.f32 %v359_v50, %v136_v30 }
 0x114   :  { %v511_v55 = vmax.f32 %v365_v49, 0.0 }
 0x115   :  { %v510_v56 = vmax.f32 %v360_v53, 0.0  ;;  %v1429_v57 = vpop.f32.mrb[4].mxu0  ;;  %1503 = vmatpush1.bf16.msra.mxu0 %v1502_v52  ;;  %1565 = vmatpush1.bf16.msra.mxu1 %v1502_v52  ;;  %v236_v53 = vpop.permute.xlu0 %235 }
 0x116   :  { %v375_v58 = vadd.f32 %v1429_v57, %v151_v34  ;;  %v369_v60 = vpop.f32.mrb[5].mxu0  ;;  %1504 = vmatprep.subr.bf16.mxu0 %v1641_v59  ;;  %1550 = vmatprep.subr.bf16.mxu1 %v1641_v59 }
 0x117   :  { %v1505_v61 = vpack.c.bf16 %v511_v55, %v510_v56  ;;  %v370_v62 = vadd.f32 %v369_v60, %v146_v35 }
 0x118   :  { %v513_v63 = vmax.f32 %v375_v58, 0.0 }
 0x119   :  { %v512_v1 = vmax.f32 %v370_v62, 0.0  ;;  %v1432_v2 = vpop.f32.mrb[6].mxu0  ;;  %1506 = vmatpush1.bf16.msra.mxu0 %v1505_v61  ;;  %1566 = vmatpush1.bf16.msra.mxu1 %v1505_v61 }
 0x11a   :  { %v385_v4 = vadd.f32 %v1432_v2, %v161_v36  ;;  %v379_v5 = vpop.f32.mrb[7].mxu0  ;;  %1507 = vmatprep.subr.bf16.mxu0 %v1641_v59  ;;  %1551 = vmatprep.subr.bf16.mxu1 %v1641_v59 }
 0x11b   :  { %v1508_v6 = vpack.c.bf16 %v513_v63, %v512_v1  ;;  %v380_v7 = vadd.f32 %v379_v5, %v156_v37 }
 0x11c   :  { %v515_v8 = vmax.f32 %v385_v4, 0.0 }
 0x11d   :  { %v514_v9 = vmax.f32 %v380_v7, 0.0  ;;  %v1435_v10 = vpop.f32.mrb[8].mxu0  ;;  %1509 = vmatpush1.bf16.msra.mxu0 %v1508_v6  ;;  %1567 = vmatpush1.bf16.msra.mxu1 %v1508_v6 }
 0x11e   :  { %v395_v11 = vadd.f32 %v1435_v10, %v171_v38  ;;  %v389_v12 = vpop.f32.mrb[9].mxu0  ;;  %1510 = vmatprep.subr.bf16.mxu0 %v1641_v59  ;;  %1552 = vmatprep.subr.bf16.mxu1 %v1641_v59  ;;  %v231_v38 = vpop.permute.xlu1 %230 }
 0x11f   :  { %v1511_v14 = vpack.c.bf16 %v515_v8, %v514_v9  ;;  %v390_v15 = vadd.f32 %v389_v12, %v166_v39 }
 0x120   :  { %v517_v17 = vmax.f32 %v395_v11, 0.0 }
 0x121   :  { %v516_v18 = vmax.f32 %v390_v15, 0.0  ;;  %v1438_v19 = vpop.f32.mrb[10].mxu0  ;;  %1512 = vmatpush1.bf16.msra.mxu0 %v1511_v14  ;;  %1568 = vmatpush1.bf16.msra.mxu1 %v1511_v14 }
 0x122   :  { %v405_v20 = vadd.f32 %v1438_v19, %v181_v40  ;;  %v399_v21 = vpop.f32.mrb[11].mxu0  ;;  %1513 = vmatprep.subr.bf16.mxu0 %v1641_v59  ;;  %1553 = vmatprep.subr.bf16.mxu1 %v1641_v59  ;;  %v241_v50 = vpop.permute.xlu1 %240 }
 0x123   :  { %v1514_v22 = vpack.c.bf16 %v517_v17, %v516_v18  ;;  %v400_v23 = vadd.f32 %v399_v21, %v176_v42 }
 0x124   :  { %v519_v24 = vmax.f32 %v405_v20, 0.0 }
 0x125   :  { %v518_v26 = vmax.f32 %v400_v23, 0.0  ;;  %v1441_v27 = vpop.f32.mrb[12].mxu0  ;;  %1515 = vmatpush1.bf16.msra.mxu0 %v1514_v22  ;;  %1569 = vmatpush1.bf16.msra.mxu1 %v1514_v22 }
 0x126   :  { %v415_v29 = vadd.f32 %v1441_v27, %v191_v51  ;;  %v409_v30 = vpop.f32.mrb[13].mxu0  ;;  %1516 = vmatprep.subr.bf16.mxu0 %v1641_v59  ;;  %1554 = vmatprep.subr.bf16.mxu1 %v1641_v59 }
 0x127   :  { %v1517_v31 = vpack.c.bf16 %v519_v24, %v518_v26  ;;  %v410_v32 = vadd.f32 %v409_v30, %v186_v54 }
 0x128   :  { %v521_v33 = vmax.f32 %v415_v29, 0.0 }
 0x129   :  { %v520_v34 = vmax.f32 %v410_v32, 0.0  ;;  %v1444_v35 = vpop.f32.mrb[14].mxu0  ;;  %1518 = vmatpush1.bf16.msra.mxu0 %v1517_v31  ;;  %1570 = vmatpush1.bf16.msra.mxu1 %v1517_v31 }
 0x12a   :  { %v425_v36 = vadd.f32 %v1444_v35, %v201_v0  ;;  %v419_v37 = vpop.f32.mrb[15].mxu0  ;;  %1519 = vmatprep.subr.bf16.mxu0 %v1641_v59  ;;  %1555 = vmatprep.subr.bf16.mxu1 %v1641_v59  ;;  %v251_v0 = vpop.permute.xlu1 %250 }
 0x12b   :  { %v1520_v39 = vpack.c.bf16 %v521_v33, %v520_v34  ;;  %v420_v40 = vadd.f32 %v419_v37, %v196_v3  ;;  %v246_v3 = vpop.permute.xlu0 %245 }
 0x12c   :  { %v523_v42 = vmax.f32 %v425_v36, 0.0 }
 0x12d   :  { %v522_v43 = vmax.f32 %v420_v40, 0.0  ;;  %v1447_v44 = vpop.f32.mrb[16].mxu0  ;;  %1521 = vmatpush1.bf16.msra.mxu0 %v1520_v39  ;;  %1571 = vmatpush1.bf16.msra.mxu1 %v1520_v39 }
 0x12e   :  { %v435_v45 = vadd.f32 %v1447_v44, %v211_v13  ;;  %v429_v46 = vpop.f32.mrb[17].mxu0  ;;  %1522 = vmatprep.subr.bf16.mxu0 %v1641_v59  ;;  %1556 = vmatprep.subr.bf16.mxu1 %v1641_v59  ;;  %v261_v12 = vpop.permute.xlu1 %260 }
 0x12f   :  { %v1523_v47 = vpack.c.bf16 %v523_v42, %v522_v43  ;;  %v430_v48 = vadd.f32 %v429_v46, %v206_v16  ;;  %v256_v15 = vpop.permute.xlu0 %255 }
 0x130   :  { %v525_v49 = vmax.f32 %v435_v45, 0.0 }
 0x131   :  { %v524_v51 = vmax.f32 %v430_v48, 0.0  ;;  %v1450_v52 = vpop.f32.mrb[18].mxu0  ;;  %1524 = vmatpush1.bf16.msra.mxu0 %v1523_v47  ;;  %1572 = vmatpush1.bf16.msra.mxu1 %v1523_v47  ;;  %v540_v48 = vld [vmem:[%s2468_s3] sm:$0xff] }
 0x132   :  { %v445_v54 = vadd.f32 %v1450_v52, %v221_v25  ;;  %v439_v55 = vpop.f32.mrb[19].mxu0  ;;  %1525 = vmatprep.subr.bf16.mxu0 %v1641_v59  ;;  %1557 = vmatprep.subr.bf16.mxu1 %v1641_v59  ;;  %v271_v25 = vpop.permute.xlu1 %270  ;;  %v566_v52 = vld [vmem:[%s2468_s3 + $0xd0] sm:$0xff] }
 0x133   :  { %v1526_v56 = vpack.c.bf16 %v525_v49, %v524_v51  ;;  %v440_v57 = vadd.f32 %v439_v55, %v216_v28  ;;  %v266_v28 = vpop.permute.xlu0 %265  ;;  %v564_v49 = vld [vmem:[%s2468_s3 + $0xc0] sm:$0xff]  ;;  %v567_v51 = vld [vmem:[%s2468_s3 + $0xd8] sm:$0xff] }
 0x134   :  { %v527_v58 = vmax.f32 %v445_v54, 0.0  ;;  %v569_v54 = vld [vmem:[%s2468_s3 + $0xe8] sm:$0xff]  ;;  %v544_v55 = vld [vmem:[%s2468_s3 + $0x20] sm:$0xff] }
 0x135   :  { %v526_v60 = vmax.f32 %v440_v57, 0.0  ;;  %v1453_v61 = vpop.f32.mrb[20].mxu0  ;;  %1527 = vmatpush1.bf16.msra.mxu0 %v1526_v56  ;;  %1573 = vmatpush1.bf16.msra.mxu1 %v1526_v56  ;;  %v568_v56 = vld [vmem:[%s2468_s3 + $0xe0] sm:$0xff]  ;;  %v547_v57 = vld [vmem:[%s2468_s3 + $0x38] sm:$0xff] }
 0x136   :  { %v455_v62 = vadd.f32 %v1453_v61, %v231_v38  ;;  %v449_v63 = vpop.f32.mrb[21].mxu0  ;;  %1528 = vmatprep.subr.bf16.mxu0 %v1641_v59  ;;  %1558 = vmatprep.subr.bf16.mxu1 %v1641_v59  ;;  %v281_v37 = vpop.permute.xlu1 %280  ;;  %v570_v61 = vld [vmem:[%s2468_s3 + $0xf0] sm:$0xff] }
 0x137   :  { %v1529_v1 = vpack.c.bf16 %v527_v58, %v526_v60  ;;  %v450_v2 = vadd.f32 %v449_v63, %v226_v41  ;;  %v276_v40 = vpop.permute.xlu0 %275  ;;  %v571_v58 = vld [vmem:[%s2468_s3 + $0xf8] sm:$0xff]  ;;  %v546_v60 = vld [vmem:[%s2468_s3 + $0x30] sm:$0xff]  ;;  %v573_v63 = vld [vmem:[%s2468_s3 + $0x108] sm:$0xff] }
 0x138   :  { %v529_v4 = vmax.f32 %v455_v62, 0.0  ;;  %v549_v62 = vld [vmem:[%s2468_s3 + $0x48] sm:$0xff] }
 0x139   :  { %v528_v5 = vmax.f32 %v450_v2, 0.0  ;;  %v1456_v6 = vpop.f32.mrb[22].mxu0  ;;  %1530 = vmatpush1.bf16.msra.mxu0 %v1529_v1  ;;  %1574 = vmatpush1.bf16.msra.mxu1 %v1529_v1  ;;  %v572_v1 = vld [vmem:[%s2468_s3 + $0x100] sm:$0xff]  ;;  %v551_v2 = vld [vmem:[%s2468_s3 + $0x58] sm:$0xff] }
 0x13a   :  { %v465_v7 = vadd.f32 %v1456_v6, %v241_v50  ;;  %v459_v8 = vpop.f32.mrb[23].mxu0  ;;  %1531 = vmatprep.subr.bf16.mxu0 %v1641_v59  ;;  %1559 = vmatprep.subr.bf16.mxu1 %v1641_v59  ;;  %v543_v50 = vld [vmem:[%s2468_s3 + $0x18] sm:$0xff]  ;;  %v553_v6 = vld [vmem:[%s2468_s3 + $0x68] sm:$0xff] }
 0x13b   :  { %v1532_v9 = vpack.c.bf16 %v529_v4, %v528_v5  ;;  %v460_v10 = vadd.f32 %v459_v8, %v236_v53  ;;  %v545_v53 = vld [vmem:[%s2468_s3 + $0x28] sm:$0xff]  ;;  %v550_v4 = vld [vmem:[%s2468_s3 + $0x50] sm:$0xff]  ;;  %v552_v8 = vld [vmem:[%s2468_s3 + $0x60] sm:$0xff] }
 0x13c   :  { %v531_v11 = vmax.f32 %v465_v7, 0.0  ;;  %v574_v5 = vld [vmem:[%s2468_s3 + $0x110] sm:$0xff]  ;;  %v577_v7 = vld [vmem:[%s2468_s3 + $0x128] sm:$0xff] }
 0x13d   :  { %v530_v13 = vmax.f32 %v460_v10, 0.0  ;;  %v1459_v14 = vpop.f32.mrb[24].mxu0  ;;  %1533 = vmatpush1.bf16.msra.mxu0 %v1532_v9  ;;  %1575 = vmatpush1.bf16.msra.mxu1 %v1532_v9  ;;  %v576_v9 = vld [vmem:[%s2468_s3 + $0x120] sm:$0xff]  ;;  %v555_v10 = vld [vmem:[%s2468_s3 + $0x78] sm:$0xff] }
 0x13e   :  { %v475_v16 = vadd.f32 %v1459_v14, %v251_v0  ;;  %v469_v17 = vpop.f32.mrb[25].mxu0  ;;  %1534 = vmatprep.subr.bf16.mxu0 %v1641_v59  ;;  %1560 = vmatprep.subr.bf16.mxu1 %v1641_v59  ;;  %v548_v0 = vld [vmem:[%s2468_s3 + $0x40] sm:$0xff]  ;;  %v557_v14 = vld [vmem:[%s2468_s3 + $0x88] sm:$0xff] }
 0x13f   :  { %v1535_v18 = vpack.c.bf16 %v531_v11, %v530_v13  ;;  %v470_v19 = vadd.f32 %v469_v17, %v246_v3  ;;  %v575_v3 = vld [vmem:[%s2468_s3 + $0x118] sm:$0xff]  ;;  %v578_v13 = vld [vmem:[%s2468_s3 + $0x130] sm:$0xff]  ;;  %v580_v17 = vld [vmem:[%s2468_s3 + $0x140] sm:$0xff] }
 0x140   :  { %v533_v20 = vmax.f32 %v475_v16, 0.0  ;;  %v579_v11 = vld [vmem:[%s2468_s3 + $0x138] sm:$0xff]  ;;  %v556_v16 = vld [vmem:[%s2468_s3 + $0x80] sm:$0xff] }
 0x141   :  { %v532_v21 = vmax.f32 %v470_v19, 0.0  ;;  %v1462_v22 = vpop.f32.mrb[26].mxu0  ;;  %1536 = vmatpush1.bf16.msra.mxu0 %v1535_v18  ;;  %1576 = vmatpush1.bf16.msra.mxu1 %v1535_v18  ;;  %v559_v18 = vld [vmem:[%s2468_s3 + $0x98] sm:$0xff] }
 0x142   :  { %v485_v23 = vadd.f32 %v1462_v22, %v261_v12  ;;  %v479_v24 = vpop.f32.mrb[27].mxu0  ;;  %1537 = vmatprep.subr.bf16.mxu0 %v1641_v59  ;;  %1561 = vmatprep.subr.bf16.mxu1 %v1641_v59  ;;  %v554_v12 = vld [vmem:[%s2468_s3 + $0x70] sm:$0xff]  ;;  %v583_v19 = vld [vmem:[%s2468_s3 + $0x158] sm:$0xff]  ;;  %v561_v22 = vld [vmem:[%s2468_s3 + $0xa8] sm:$0xff] }
 0x143   :  { %v1538_v26 = vpack.c.bf16 %v533_v20, %v532_v21  ;;  %v480_v27 = vadd.f32 %v479_v24, %v256_v15  ;;  %v581_v15 = vld [vmem:[%s2468_s3 + $0x148] sm:$0xff]  ;;  %v558_v20 = vld [vmem:[%s2468_s3 + $0x90] sm:$0xff]  ;;  %v560_v24 = vld [vmem:[%s2468_s3 + $0xa0] sm:$0xff] }
 0x144   :  { %v535_v29 = vmax.f32 %v485_v23, 0.0  ;;  %v582_v21 = vld [vmem:[%s2468_s3 + $0x150] sm:$0xff]  ;;  %v585_v23 = vld [vmem:[%s2468_s3 + $0x168] sm:$0xff] }
 0x145   :  { %v534_v30 = vmax.f32 %v480_v27, 0.0  ;;  %v1465_v31 = vpop.f32.mrb[28].mxu0  ;;  %1539 = vmatpush1.bf16.msra.mxu0 %v1538_v26  ;;  %1577 = vmatpush1.bf16.msra.mxu1 %v1538_v26  ;;  %v563_v26 = vld [vmem:[%s2468_s3 + $0xb8] sm:$0xff] }
 0x146   :  { %v495_v32 = vadd.f32 %v1465_v31, %v271_v25  ;;  %v489_v33 = vpop.f32.mrb[29].mxu0  ;;  %1540 = vmatprep.subr.bf16.mxu0 %v1641_v59  ;;  %1562 = vmatprep.subr.bf16.mxu1 %v1641_v59  ;;  %v584_v25 = vld [vmem:[%s2468_s3 + $0x160] sm:$0xff]  ;;  %v587_v27 = vld [vmem:[%s2468_s3 + $0x178] sm:$0xff] }
 0x147   :  { %v1541_v34 = vpack.c.bf16 %v535_v29, %v534_v30  ;;  %v490_v35 = vadd.f32 %v489_v33, %v266_v28  ;;  %v562_v28 = vld [vmem:[%s2468_s3 + $0xb0] sm:$0xff]  ;;  %v589_v30 = vld [vmem:[%s2468_s3 + $0x188] sm:$0xff]  ;;  %v588_v31 = vld [vmem:[%s2468_s3 + $0x180] sm:$0xff] }
 0x148   :  { %v537_v36 = vmax.f32 %v495_v32, 0.0  ;;  %v586_v29 = vld [vmem:[%s2468_s3 + $0x170] sm:$0xff]  ;;  %v591_v32 = vld [vmem:[%s2468_s3 + $0x198] sm:$0xff] }
 0x149   :  { %v536_v38 = vmax.f32 %v490_v35, 0.0  ;;  %v1468_v39 = vpop.f32.mrb[30].mxu0  ;;  %1542 = vmatpush1.bf16.msra.mxu0 %v1541_v34  ;;  %1578 = vmatpush1.bf16.msra.mxu1 %v1541_v34  ;;  %v590_v33 = vld [vmem:[%s2468_s3 + $0x190] sm:$0xff]  ;;  %v593_v34 = vld [vmem:[%s2468_s3 + $0x1a8] sm:$0xff]  ;;  %v592_v35 = vld [vmem:[%s2468_s3 + $0x1a0] sm:$0xff] }
 0x14a   :  { %v505_v41 = vadd.f32 %v1468_v39, %v281_v37  ;;  %v499_v42 = vpop.f32.mrb[31].mxu0  ;;  %1543 = vmatprep.subr.bf16.mxu0 %v1641_v59  ;;  %1563 = vmatprep.subr.bf16.mxu1 %v1641_v59  ;;  %v594_v37 = vld [vmem:[%s2468_s3 + $0x1b0] sm:$0xff]  ;;  %v596_v39 = vld [vmem:[%s2468_s3 + $0x1c0] sm:$0xff] }
 0x14b   :  { %v1544_v43 = vpack.c.bf16 %v537_v36, %v536_v38  ;;  %v500_v44 = vadd.f32 %v499_v42, %v276_v40  ;;  %v595_v36 = vld [vmem:[%s2468_s3 + $0x1b8] sm:$0xff]  ;;  %v597_v38 = vld [vmem:[%s2468_s3 + $0x1c8] sm:$0xff] }
 0x14c   :  { %v539_v45 = vmax.f32 %v505_v41, 0.0  ;;  %v599_v40 = vld [vmem:[%s2468_s3 + $0x1d8] sm:$0xff]  ;;  %v598_v41 = vld [vmem:[%s2468_s3 + $0x1d0] sm:$0xff]  ;;  %v601_v42 = vld [vmem:[%s2468_s3 + $0x1e8] sm:$0xff] }
 0x14d   :  { %v538_v46 = vmax.f32 %v500_v44, 0.0  ;;  %1545 = vmatpush1.bf16.msra.mxu0 %v1544_v43  ;;  %1579 = vmatpush1.bf16.msra.mxu1 %v1544_v43  ;;  %v600_v43 = vld [vmem:[%s2468_s3 + $0x1e0] sm:$0xff]  ;;  %v603_v44 = vld [vmem:[%s2468_s3 + $0x1f8] sm:$0xff] }
 0x14e   :  { %1546 = vmatprep.subr.bf16.mxu0 %v1641_v59  ;;  %1564 = vmatprep.subr.bf16.mxu1 %v1641_v59  ;;  %v542_v59 = vld [vmem:[%s2468_s3 + $0x10] sm:$0xff] }
 0x14f   :  { %v1547_v47 = vpack.c.bf16 %v539_v45, %v538_v46  ;;  %v602_v45 = vld [vmem:[%s2468_s3 + $0x1f0] sm:$0xff]  ;;  %v639_v46 = vpop.permute.xlu0 %638  ;;  %s1642_s3 = smov [#allocation6]  }
 0x150   :  { %s1332_s0 = sshll.u32 %s1642_s3, 4  ;;  %s1333_s0 = int_to_ptr.vmem [resolvable:$true] %s1332_s0 }
 0x151   :  { %1548 = vmatpush1.bf16.msra.mxu0 %v1547_v47  ;;  %1580 = vmatpush1.bf16.msra.mxu1 %v1547_v47  ;;  %v644_v47 = vpop.permute.xlu1 %643  ;;  %s1611_s21 = scalar_lea.vmem %s1333_s0, 16  ;;  %s1615_s22 = scalar_lea.vmem %s1333_s0, 32 }
 0x152   :  { %p1612_p8 = scmp.ne.s32.totalorder %s1333_s0, %s1611_s21  ;;  %p1616_p9 = scmp.lt.s32.totalorder %s1333_s0, %s1333_s0 }
 0x153   :  { %p1617_p10 = scmp.lt.s32.totalorder %s1615_s22, %s1611_s21 }
 0x154   :  { %861 = vmatmul.mubr.f32.vlgmr.msra.gmra.mrb[32].mxu0 %v540_v48  ;;  %921 = vmatmul.mubr.f32.vlgmr.msra.gmra.mrb[0].mxu1 %v564_v49  ;;  %v649_v48 = vpop.permute.xlu0 %648 }
 0x155   :  { %865 = vmatprep.mubr.f32.mxu0 %v543_v50  ;;  %925 = vmatprep.mubr.f32.mxu1 %v567_v51  ;;  %v654_v49 = vpop.permute.xlu1 %653  ;;  %p1618_p11 = por %p1617_p10, %p1616_p9 }
 0x157   :  { %p1619_p12 = pnand %p1618_p11, %p1612_p8 }
 0x158   :  { %866 = vmatmul.mubr.f32.gmra.mrb[34].mxu0 %v542_v59  ;;  %926 = vmatmul.mubr.f32.gmra.mrb[2].mxu1 %v566_v52  ;;  %v2306_v50 = vpop.permute.xlu0 %658 }
 0x159   :  { %870 = vmatprep.mubr.f32.mxu0 %v545_v53  ;;  %930 = vmatprep.mubr.f32.mxu1 %v569_v54  ;;  %v2308_v51 = vpop.permute.xlu1 %663 }
 0x15c   :  { %871 = vmatmul.mubr.f32.gmra.mrb[36].mxu0 %v544_v55  ;;  %931 = vmatmul.mubr.f32.gmra.mrb[4].mxu1 %v568_v56  ;;  %v2310_v59 = vpop.permute.xlu0 %668 }
 0x15d   :  { %875 = vmatprep.mubr.f32.mxu0 %v547_v57  ;;  %935 = vmatprep.mubr.f32.mxu1 %v571_v58  ;;  %v2312_v52 = vpop.permute.xlu1 %673 }
 0x160   :  { %876 = vmatmul.mubr.f32.gmra.mrb[38].mxu0 %v546_v60  ;;  %936 = vmatmul.mubr.f32.gmra.mrb[6].mxu1 %v570_v61  ;;  %v2314_v53 = vpop.permute.xlu0 %678 }
 0x161   :  { %880 = vmatprep.mubr.f32.mxu0 %v549_v62  ;;  %940 = vmatprep.mubr.f32.mxu1 %v573_v63  ;;  %v2316_v54 = vpop.permute.xlu1 %683 }
 0x164   :  { %881 = vmatmul.mubr.f32.gmra.mrb[40].mxu0 %v548_v0  ;;  %941 = vmatmul.mubr.f32.gmra.mrb[8].mxu1 %v572_v1  ;;  %v2318_v55 = vpop.permute.xlu0 %688 }
 0x165   :  { %885 = vmatprep.mubr.f32.mxu0 %v551_v2  ;;  %945 = vmatprep.mubr.f32.mxu1 %v575_v3  ;;  %v2320_v56 = vpop.permute.xlu1 %693 }
 0x168   :  { %886 = vmatmul.mubr.f32.gmra.mrb[42].mxu0 %v550_v4  ;;  %946 = vmatmul.mubr.f32.gmra.mrb[10].mxu1 %v574_v5  ;;  %v2322_v57 = vpop.permute.xlu0 %698 }
 0x169   :  { %890 = vmatprep.mubr.f32.mxu0 %v553_v6  ;;  %950 = vmatprep.mubr.f32.mxu1 %v577_v7  ;;  %v2324_v58 = vpop.permute.xlu1 %703 }
 0x16c   :  { %891 = vmatmul.mubr.f32.gmra.mrb[44].mxu0 %v552_v8  ;;  %951 = vmatmul.mubr.f32.gmra.mrb[12].mxu1 %v576_v9  ;;  %v2326_v60 = vpop.permute.xlu0 %708 }
 0x16d   :  { %895 = vmatprep.mubr.f32.mxu0 %v555_v10  ;;  %955 = vmatprep.mubr.f32.mxu1 %v579_v11  ;;  %v2328_v61 = vpop.permute.xlu1 %713 }
 0x170   :  { %896 = vmatmul.mubr.f32.gmra.mrb[46].mxu0 %v554_v12  ;;  %956 = vmatmul.mubr.f32.gmra.mrb[14].mxu1 %v578_v13  ;;  %v2330_v62 = vpop.permute.xlu0 %718 }
 0x171   :  { %900 = vmatprep.mubr.f32.mxu0 %v557_v14  ;;  %960 = vmatprep.mubr.f32.mxu1 %v581_v15  ;;  %v2332_v63 = vpop.permute.xlu1 %723 }
 0x174   :  { %901 = vmatmul.mubr.f32.gmra.mrb[48].mxu0 %v556_v16  ;;  %961 = vmatmul.mubr.f32.gmra.mrb[16].mxu1 %v580_v17  ;;  %v2334_v0 = vpop.permute.xlu0 %728 }
 0x175   :  { %905 = vmatprep.mubr.f32.mxu0 %v559_v18  ;;  %965 = vmatprep.mubr.f32.mxu1 %v583_v19  ;;  %v2336_v1 = vpop.permute.xlu1 %733 }
 0x178   :  { %906 = vmatmul.mubr.f32.gmra.mrb[50].mxu0 %v558_v20  ;;  %966 = vmatmul.mubr.f32.gmra.mrb[18].mxu1 %v582_v21  ;;  %v2338_v2 = vpop.permute.xlu0 %738 }
 0x179   :  { %910 = vmatprep.mubr.f32.mxu0 %v561_v22  ;;  %970 = vmatprep.mubr.f32.mxu1 %v585_v23  ;;  %v2340_v3 = vpop.permute.xlu1 %743 }
 0x17c   :  { %911 = vmatmul.mubr.f32.gmra.mrb[52].mxu0 %v560_v24  ;;  %971 = vmatmul.mubr.f32.gmra.mrb[20].mxu1 %v584_v25  ;;  %v2342_v4 = vpop.permute.xlu0 %748 }
 0x17d   :  { %915 = vmatprep.mubr.f32.mxu0 %v563_v26  ;;  %975 = vmatprep.mubr.f32.mxu1 %v587_v27  ;;  %v2344_v5 = vpop.permute.xlu1 %753 }
 0x180   :  { %916 = vmatmul.mubr.f32.gmra.mrb[54].mxu0 %v562_v28  ;;  %976 = vmatmul.mubr.f32.gmra.mrb[22].mxu1 %v586_v29  ;;  %v2346_v6 = vpop.permute.xlu0 %758 }
 0x181   :  { %980 = vmatprep.mubr.f32.mxu1 %v589_v30  ;;  %v2348_v7 = vpop.permute.xlu1 %763 }
 0x184   :  { %981 = vmatmul.mubr.f32.gmra.mrb[24].mxu1 %v588_v31  ;;  %v2350_v8 = vpop.permute.xlu0 %768 }
 0x185   :  { %985 = vmatprep.mubr.f32.mxu1 %v591_v32  ;;  %v2352_v9 = vpop.permute.xlu1 %773 }
 0x188   :  { %986 = vmatmul.mubr.f32.gmra.mrb[26].mxu1 %v590_v33  ;;  %v2354_v10 = vpop.permute.xlu0 %778 }
 0x189   :  { %990 = vmatprep.mubr.f32.mxu1 %v593_v34  ;;  %v1088_v11 = vpop.permute.xlu1 %1087 }
 0x18c   :  { %991 = vmatmul.mubr.f32.gmra.mrb[28].mxu1 %v592_v35  ;;  %v1093_v12 = vpop.permute.xlu0 %1092 }
 0x18d   :  { %995 = vmatprep.mubr.f32.mxu1 %v595_v36  ;;  %v1098_v13 = vpop.permute.xlu1 %1097 }
 0x190   :  { %996 = vmatmul.mubr.f32.gmra.mrb[30].mxu1 %v594_v37  ;;  %v1103_v14 = vpop.permute.xlu0 %1102 }
 0x191   :  { %1000 = vmatprep.mubr.f32.mxu1 %v597_v38  ;;  %v1108_v15 = vpop.permute.xlu1 %1107 }
 0x194   :  { %1001 = vmatmul.mubr.f32.gmra.mrb[32].mxu1 %v596_v39  ;;  %v1113_v16 = vpop.permute.xlu0 %1112 }
 0x195   :  { %1005 = vmatprep.mubr.f32.mxu1 %v599_v40  ;;  %v2356_v17 = vpop.permute.xlu1 %1117 }
 0x198   :  { %1006 = vmatmul.mubr.f32.gmra.mrb[34].mxu1 %v598_v41  ;;  %v2358_v18 = vpop.permute.xlu0 %1122 }
 0x199   :  { %1010 = vmatprep.mubr.f32.mxu1 %v601_v42  ;;  %v2360_v19 = vpop.permute.xlu1 %1127 }
 0x19c   :  { %1011 = vmatmul.mubr.f32.gmra.mrb[36].mxu1 %v600_v43  ;;  %v2364_v25 = vpop.permute.xlu0 %1132 }
 0x19d   :  { %1015 = vmatprep.mubr.f32.mxu1 %v603_v44  ;;  %v2368_v32 = vpop.permute.xlu1 %1137 }
 0x1a0   :  { %1016 = vmatmul.mubr.f32.gmra.mrb[38].mxu1 %v602_v45  ;;  %v2372_v41 = vpop.permute.xlu0 %1142 }
 0x227   :  { %v862_v20 = vpop.f32.mrb[32].mxu0  ;;  %v2362_v21 = vpop.f32.mrb[0].mxu1 }
 0x228   :  { %v863_v22 = vadd.f32 %v862_v20, %v639_v46  ;;  %v864_v23 = vpop.f32.mrb[33].mxu0  ;;  %v924_v24 = vpop.f32.mrb[1].mxu1 }
 0x229   :  { %v2376_v23 = vpop.permute.xlu1 %1147 }
 0x22a   :  { %v1021_v28 = vmax.f32 %v863_v22, 0.0 }
 0x22b   :  { %v867_v26 = vpop.f32.mrb[34].mxu0  ;;  %v2366_v27 = vpop.f32.mrb[2].mxu1 }
 0x22c   :  { %v868_v29 = vadd.f32 %v867_v26, %v644_v47  ;;  %v869_v30 = vpop.f32.mrb[35].mxu0  ;;  %v929_v31 = vpop.f32.mrb[3].mxu1  ;;  %v1245_v36 = vmul.f32 %v1088_v11, %v1021_v28 }
 0x22d   :  { %v2381_v31 = vpop.permute.xlu0 %1152 }
 0x22e   :  { %v1022_v33 = vmax.f32 %v868_v29, 0.0 }
 0x22f   :  { %v872_v34 = vpop.f32.mrb[36].mxu0  ;;  %v2370_v35 = vpop.f32.mrb[4].mxu1 }
 0x230   :  { %v1246_v37 = vmul.f32 %v1093_v12, %v1022_v33  ;;  %v873_v38 = vadd.f32 %v872_v34, %v649_v48  ;;  %v874_v39 = vpop.f32.mrb[37].mxu0  ;;  %v934_v40 = vpop.f32.mrb[5].mxu1 }
 0x231   :  { %v2386_v40 = vpop.permute.xlu1 %1157 }
 0x232   :  { %v1277_v42 = vadd.f32 %v1246_v37, %v1245_v36  ;;  %v1023_v43 = vmax.f32 %v873_v38, 0.0 }
 0x233   :  { %v877_v44 = vpop.f32.mrb[38].mxu0  ;;  %v2374_v45 = vpop.f32.mrb[6].mxu1 }
 0x234   :  { %v1247_v46 = vmul.f32 %v1098_v13, %v1023_v43  ;;  %v878_v47 = vadd.f32 %v877_v44, %v654_v49  ;;  %v879_v20 = vpop.f32.mrb[39].mxu0  ;;  %v939_v22 = vpop.f32.mrb[7].mxu1 }
 0x235   :  { %v2391_v22 = vpop.permute.xlu0 %1162 }
 0x236   :  { %v1278_v24 = vadd.f32 %v1277_v42, %v1247_v46  ;;  %v1024_v26 = vmax.f32 %v878_v47, 0.0 }
 0x237   :  { %v882_v11 = vpop.f32.mrb[40].mxu0  ;;  %v2378_v12 = vpop.f32.mrb[8].mxu1 }
 0x238   :  { %v1248_v48 = vmul.f32 %v1103_v14, %v1024_v26  ;;  %v883_v28 = vadd.f32 %v882_v11, %v2306_v50  ;;  %v884_v29 = vpop.f32.mrb[41].mxu0  ;;  %v944_v30 = vpop.f32.mrb[9].mxu1 }
 0x239   :  { %v2397_v30 = vpop.permute.xlu1 %1167 }
 0x23a   :  { %v1279_v33 = vadd.f32 %v1278_v24, %v1248_v48  ;;  %v1025_v34 = vmax.f32 %v883_v28, 0.0 }
 0x23b   :  { %v887_v13 = vpop.f32.mrb[42].mxu0  ;;  %v2383_v49 = vpop.f32.mrb[10].mxu1 }
 0x23c   :  { %v1249_v36 = vmul.f32 %v1108_v15, %v1025_v34  ;;  %v888_v37 = vadd.f32 %v887_v13, %v2308_v51  ;;  %v889_v38 = vpop.f32.mrb[43].mxu0  ;;  %v949_v39 = vpop.f32.mrb[11].mxu1 }
 0x23d   :  { %v2403_v39 = vpop.permute.xlu0 %1172 }
 0x23e   :  { %v1280_v42 = vadd.f32 %v1279_v33, %v1249_v36  ;;  %v1026_v14 = vmax.f32 %v888_v37, 0.0 }
 0x23f   :  { %v892_v43 = vpop.f32.mrb[44].mxu0  ;;  %v2388_v50 = vpop.f32.mrb[12].mxu1 }
 0x240   :  { %v1250_v44 = vmul.f32 %v1113_v16, %v1026_v14  ;;  %v893_v46 = vadd.f32 %v892_v43, %v2310_v59  ;;  %v894_v47 = vpop.f32.mrb[45].mxu0  ;;  %v954_v20 = vpop.f32.mrb[13].mxu1 }
 0x241   :  { %v2409_v20 = vpop.permute.xlu1 %1177 }
 0x242   :  { %v1281_v24 = vadd.f32 %v1280_v42, %v1250_v44  ;;  %v1027_v15 = vmax.f32 %v893_v46, 0.0 }
 0x243   :  { %v897_v26 = vpop.f32.mrb[46].mxu0  ;;  %v2393_v51 = vpop.f32.mrb[14].mxu1 }
 0x244   :  { %v1251_v11 = vmul.f32 %v2356_v17, %v1027_v15  ;;  %v898_v48 = vadd.f32 %v897_v26, %v2312_v52  ;;  %v899_v28 = vpop.f32.mrb[47].mxu0  ;;  %v959_v29 = vpop.f32.mrb[15].mxu1 }
 0x245   :  { %v1183_v29 = vpop.permute.xlu0 %1182 }
 0x246   :  { %v1282_v16 = vadd.f32 %v1281_v24, %v1251_v11  ;;  %v1028_v33 = vmax.f32 %v898_v48, 0.0 }
 0x247   :  { %v902_v59 = vpop.f32.mrb[48].mxu0  ;;  %v2399_v34 = vpop.f32.mrb[16].mxu1 }
 0x248   :  { %v1252_v13 = vmul.f32 %v2358_v18, %v1028_v33  ;;  %v903_v36 = vadd.f32 %v902_v59, %v2314_v53  ;;  %v904_v37 = vpop.f32.mrb[49].mxu0  ;;  %v964_v38 = vpop.f32.mrb[17].mxu1 }
 0x24a   :  { %v1283_v17 = vadd.f32 %v1282_v16, %v1252_v13  ;;  %v1029_v42 = vmax.f32 %v903_v36, 0.0  ;;  %v928_v13 = vadd.f32 %v2366_v27, %v2324_v58 }
 0x24b   :  { %v907_v52 = vpop.f32.mrb[50].mxu0  ;;  %v2405_v14 = vpop.f32.mrb[18].mxu1 }
 0x24c   :  { %v1253_v43 = vmul.f32 %v2360_v19, %v1029_v42  ;;  %v908_v44 = vadd.f32 %v907_v52, %v2316_v54  ;;  %v909_v46 = vpop.f32.mrb[51].mxu0  ;;  %v969_v47 = vpop.f32.mrb[19].mxu1  ;;  %v923_v19 = vadd.f32 %v2362_v21, %v2322_v57  ;;  %v933_v42 = vadd.f32 %v2370_v35, %v2326_v60 }
 0x24d   :  { %v943_v47 = vadd.f32 %v2378_v12, %v2330_v62 }
 0x24e   :  { %v1284_v18 = vadd.f32 %v1283_v17, %v1253_v43  ;;  %v1030_v24 = vmax.f32 %v908_v44, 0.0  ;;  %v1033_v17 = vmax.f32 %v923_v19, 0.0  ;;  %v1034_v43 = vmax.f32 %v928_v13, 0.0 }
 0x24f   :  { %v912_v53 = vpop.f32.mrb[52].mxu0  ;;  %v2411_v15 = vpop.f32.mrb[20].mxu1  ;;  %v938_v44 = vadd.f32 %v2374_v45, %v2328_v61  ;;  %v1035_v46 = vmax.f32 %v933_v42, 0.0 }
 0x250   :  { %v1254_v26 = vmul.f32 %v2364_v25, %v1030_v24  ;;  %v913_v11 = vadd.f32 %v912_v53, %v2318_v55  ;;  %v914_v48 = vpop.f32.mrb[53].mxu0  ;;  %v974_v28 = vpop.f32.mrb[21].mxu1  ;;  %v1258_v35 = vmul.f32 %v2381_v31, %v1034_v43  ;;  %v958_v31 = vadd.f32 %v2393_v51, %v2336_v1 }
 0x251   :  { %v1188_v55 = vpop.permute.xlu1 %1187  ;;  %v1036_v53 = vmax.f32 %v938_v44, 0.0 }
 0x252   :  { %v1285_v54 = vadd.f32 %v1284_v18, %v1254_v26  ;;  %v1031_v16 = vmax.f32 %v913_v11, 0.0  ;;  %v948_v26 = vadd.f32 %v2383_v49, %v2332_v63  ;;  %v1037_v11 = vmax.f32 %v943_v47, 0.0 }
 0x253   :  { %v917_v33 = vpop.f32.mrb[54].mxu0  ;;  %v977_v59 = vpop.f32.mrb[22].mxu1  ;;  %v1260_v12 = vmul.f32 %v2391_v22, %v1036_v53  ;;  %v968_v22 = vadd.f32 %v2405_v14, %v2340_v3 }
 0x254   :  { %v1255_v36 = vmul.f32 %v2368_v32, %v1031_v16  ;;  %v918_v37 = vadd.f32 %v917_v33, %v2320_v56  ;;  %v919_v25 = vpop.f32.mrb[55].mxu0  ;;  %v979_v38 = vpop.f32.mrb[23].mxu1  ;;  %v1257_v56 = vmul.f32 %v2376_v23, %v1033_v17  ;;  %v953_v23 = vadd.f32 %v2388_v50, %v2334_v0 }
 0x255   :  { %v1193_v32 = vpop.permute.xlu0 %1192  ;;  %v1198_v24 = vpop.permute.xlu1 %1197  ;;  %v1038_v19 = vmax.f32 %v948_v26, 0.0  ;;  %v1261_v49 = vmul.f32 %v2397_v30, %v1037_v11  ;;  %v973_v30 = vadd.f32 %v2411_v15, %v2342_v4 }
 0x256   :  { %v1286_v52 = vadd.f32 %v1285_v54, %v1255_v36  ;;  %v1032_v57 = vmax.f32 %v918_v37, 0.0  ;;  %v1039_v33 = vmax.f32 %v953_v23, 0.0  ;;  %v1040_v36 = vmax.f32 %v958_v31, 0.0 }
 0x257   :  { %v982_v21 = vpop.f32.mrb[24].mxu1  ;;  %v1262_v50 = vmul.f32 %v2403_v39, %v1038_v19  ;;  %v978_v39 = vadd.f32 %v977_v59, %v2344_v5  ;;  %v1043_v3 = vmax.f32 %v973_v30, 0.0 }
 0x258   :  { %v1256_v58 = vmul.f32 %v2372_v41, %v1032_v57  ;;  %v984_v27 = vpop.f32.mrb[25].mxu1  ;;  %v1259_v41 = vmul.f32 %v2386_v40, %v1035_v46  ;;  %v963_v40 = vadd.f32 %v2399_v34, %v2338_v2  ;;  %v1263_v51 = vmul.f32 %v2409_v20, %v1039_v33 }
 0x259   :  { %v1203_v28 = vpop.permute.xlu0 %1202  ;;  %v1208_v63 = vpop.permute.xlu1 %1207  ;;  %v1264_v34 = vmul.f32 %v1183_v29, %v1040_v36  ;;  %v1044_v46 = vmax.f32 %v978_v39, 0.0  ;;  %v1267_v29 = vmul.f32 %v1198_v24, %v1043_v3 }
 0x25a   :  { %v1287_v18 = vadd.f32 %v1286_v52, %v1256_v58  ;;  %v1041_v38 = vmax.f32 %v963_v40, 0.0  ;;  %v1042_v52 = vmax.f32 %v968_v22, 0.0  ;;  %v983_v58 = vadd.f32 %v982_v21, %v2346_v6 }
 0x25b   :  { %v987_v60 = vpop.f32.mrb[26].mxu1 }
 0x25c   :  { %v1288_v61 = vadd.f32 %v1287_v18, %v1257_v56  ;;  %v989_v45 = vpop.f32.mrb[27].mxu1  ;;  %v1265_v44 = vmul.f32 %v1188_v55, %v1041_v38  ;;  %v1266_v56 = vmul.f32 %v1193_v32, %v1042_v52  ;;  %v988_v4 = vadd.f32 %v987_v60, %v2348_v7 }
 0x25d   :  { %v1213_v1 = vpop.permute.xlu0 %1212  ;;  %v1218_v42 = vpop.permute.xlu1 %1217  ;;  %v1045_v53 = vmax.f32 %v983_v58, 0.0  ;;  %v1268_v55 = vmul.f32 %v1203_v28, %v1044_v46 }
 0x25e   :  { %v1289_v48 = vadd.f32 %v1288_v61, %v1258_v35  ;;  %v1046_v61 = vmax.f32 %v988_v4, 0.0 }
 0x25f   :  { %v992_v62 = vpop.f32.mrb[28].mxu1 }
 0x260   :  { %v1290_v54 = vadd.f32 %v1289_v48, %v1259_v41  ;;  %v994_v16 = vpop.f32.mrb[29].mxu1  ;;  %v993_v5 = vadd.f32 %v992_v62, %v2350_v8  ;;  %v1269_v41 = vmul.f32 %v1208_v63, %v1045_v53  ;;  %v1270_v48 = vmul.f32 %v1213_v1, %v1046_v61 }
 0x261   :  { %v784_v27 = vpop.permute.xlu0 %783  ;;  %v1223_v18 = vpop.permute.xlu1 %1222 }
 0x262   :  { %v1291_v13 = vadd.f32 %v1290_v54, %v1260_v12  ;;  %v1047_v11 = vmax.f32 %v993_v5, 0.0 }
 0x263   :  { %v997_v0 = vpop.f32.mrb[30].mxu1 }
 0x264   :  { %v1292_v37 = vadd.f32 %v1291_v13, %v1261_v49  ;;  %v999_v25 = vpop.f32.mrb[31].mxu1  ;;  %v998_v6 = vadd.f32 %v997_v0, %v2352_v9  ;;  %v1271_v28 = vmul.f32 %v1218_v42, %v1047_v11 }
 0x265   :  { %v789_v45 = vpop.permute.xlu0 %788  ;;  %v1228_v60 = vpop.permute.xlu1 %1227 }
 0x266   :  { %v1293_v17 = vadd.f32 %v1292_v37, %v1262_v50  ;;  %v1048_v12 = vmax.f32 %v998_v6, 0.0 }
 0x267   :  { %v1002_v2 = vpop.f32.mrb[32].mxu1 }
 0x268   :  { %v1294_v57 = vadd.f32 %v1293_v17, %v1263_v51  ;;  %v1004_v43 = vpop.f32.mrb[33].mxu1  ;;  %v1003_v7 = vadd.f32 %v1002_v2, %v2354_v10  ;;  %v1272_v49 = vmul.f32 %v1223_v18, %v1048_v12  ;;  %v1320_v17 = vlaneseq }
 0x269   :  { %v794_v16 = vpop.permute.xlu0 %793  ;;  %v1233_v63 = vpop.permute.xlu1 %1232 }
 0x26a   :  { %v1295_v14 = vadd.f32 %v1294_v57, %v1264_v34  ;;  %v1049_v31 = vmax.f32 %v1003_v7, 0.0  ;;  %v1321_v34 = vshrl.u32 %v1320_v17, 7 }
 0x26b   :  { %v1007_v20 = vpop.f32.mrb[34].mxu1 }
 0x26c   :  { %v1296_v47 = vadd.f32 %v1295_v14, %v1265_v44  ;;  %v1009_v15 = vpop.f32.mrb[35].mxu1  ;;  %v1008_v19 = vadd.f32 %v1007_v20, %v784_v27  ;;  %v1273_v0 = vmul.f32 %v1228_v60, %v1049_v31  ;;  %v1322_v57 = vsub.s32 0, %v1321_v34 }
 0x26d   :  { %v1238_v37 = vpop.permute.xlu0 %1237  ;;  %v1243_v51 = vpop.permute.xlu1 %1242 }
 0x26e   :  { %v1297_v35 = vadd.f32 %v1296_v47, %v1266_v56  ;;  %v1050_v33 = vmax.f32 %v1008_v19, 0.0 }
 0x26f   :  { %v1012_v59 = vpop.f32.mrb[36].mxu1 }
 0x270   :  { %v1298_v26 = vadd.f32 %v1297_v35, %v1267_v29  ;;  %v1014_v21 = vpop.f32.mrb[37].mxu1  ;;  %v1013_v54 = vadd.f32 %v1012_v59, %v789_v45  ;;  %v1274_v36 = vmul.f32 %v1233_v63, %v1050_v33 }
 0x271   :  { %v1318_v44 = vpop.permute.xlu0 %1317 }
 0x272   :  { %v1299_v32 = vadd.f32 %v1298_v26, %v1268_v55  ;;  %v1051_v10 = vmax.f32 %v1013_v54, 0.0  ;;  %v1323_v14 = vrot.slane %v1318_v44, %v1322_v57 }
 0x273   :  { %v1017_v23 = vpop.f32.mrb[38].mxu1 }
 0x274   :  { %v1300_v24 = vadd.f32 %v1299_v32, %v1269_v41  ;;  %v1019_v8 = vpop.f32.mrb[39].mxu1  ;;  %v1018_v40 = vadd.f32 %v1017_v23, %v794_v16  ;;  %v1275_v1 = vmul.f32 %v1238_v37, %v1051_v10 }
 0x276   :  { %v1301_v62 = vadd.f32 %v1300_v24, %v1270_v48  ;;  %v1052_v22 = vmax.f32 %v1018_v40, 0.0 }
 0x278   :  { %v1302_v9 = vadd.f32 %v1301_v62, %v1271_v28  ;;  %v1276_v30 = vmul.f32 %v1243_v51, %v1052_v22 }
 0x27a   :  { %v1303_v13 = vadd.f32 %v1302_v9, %v1272_v49 }
 0x27c   :  { %v1304_v50 = vadd.f32 %v1303_v13, %v1273_v0 }
 0x27e   :  { %v1305_v25 = vadd.f32 %v1304_v50, %v1274_v36 }
 0x280   :  { %v1306_v38 = vadd.f32 %v1305_v25, %v1275_v1 }
 0x282   :  { %v1307_v42 = vadd.f32 %v1306_v38, %v1276_v30 }
 0x284   :  { %v1308_v2 = vrot.slane %v1307_v42, 4 }
 0x286   :  { %v1309_v52 = vadd.f32 %v1308_v2, %v1307_v42 }
 0x288   :  { %v1310_v39 = vrot.slane %v1309_v52, 2 }
 0x28a   :  { %v1311_v43 = vadd.f32 %v1310_v39, %v1309_v52 }
 0x28c   :  { %v1312_v3 = vrot.slane %v1311_v43, 1 }
 0x28e   :  { %v1313_v58 = vadd.f32 %v1312_v3, %v1311_v43 }
 0x290   :  { %v1324_v27 = vadd.f32 %v1323_v14, %v1313_v58 }
 0x292   :  { %1325 = vst [vmem:[#allocation6] sm:$0x1] %v1324_v27 }
 0x293   :  { %1622 = shalt.err (!%p1619_p12)
}
 0x294   :  { %s1623_s25 = scalar_lea.hbm %s2472_s7, 16 }
 0x295   :  { %p1624_p13 = scmp.ne.s32.totalorder %s2472_s7, %s1623_s25  ;;  %p1627_p0 = scmp.lt.u32.totalorder %s1623_s25, %s2472_s7 }
 0x297   :  { %p1629_p1 = pnand %p1627_p0, %p1624_p13 }
 0x299   :  { %1632 = shalt.err (!%p1629_p1)
}
 0x29a   :  { %1335 = dma.vmem_to_hbm [thread:$0]  %s1333_s0, 16, %s2472_s7, [#allocation5]  }
 0x29b   :  { %1635 = dma.done.wait [#allocation5], 16  }
 0x29c   :  { %1636 = vsyncadd [#allocation5], 4294967280 }
 0x29d   :  { %1339 = vsyncpa [#allocation4], 1 }
 0x29e   :  { %1340 = vsyncpa [#allocation5], 1 }

</bundles_post_ra>
